<compile_context>
chip_gen: v6e
topology: v6e:2x2x1
jax: 0.10.0
libtpu: 0.0.40
codegen_flags: <defaults>
</compile_context>

<pallas_src>
import functools
import math

import jax
import jax.numpy as jnp
from jax import lax
from jax.experimental import pallas as pl
from jax.experimental.pallas import tpu as pltpu


def _round_up(x, m):
    return (x + m - 1) // m * m


def _logmel_kernel(x_ref, w_ref, o_ref, max_ref, *,
                   amin, db_offset, is_log, tm, m_total):
    """(tm, K) @ (K, N_pad) + power_to_db epilogue + masked per-tile row max."""
    mel = jnp.dot(x_ref[...], w_ref[...], preferred_element_type=jnp.float32)
    if is_log:
        # 10*log10(max(mel, amin)) - 10*log10(max(amin, ref))
        val = jnp.log(jnp.maximum(mel, amin)) * (10.0 / math.log(10.0)) - db_offset
    else:
        val = mel
    o_ref[...] = val.astype(o_ref.dtype)

    # Per-tile max for the top_db clamp.  The last M tile may be partial, so
    # mask out-of-bounds (garbage) rows with -inf; padded N columns hold the
    # minimum possible value and cannot inflate the max.
    row = lax.broadcasted_iota(jnp.int32, val.shape, 0)
    valid = row < (m_total - pl.program_id(0) * tm)
    rowmax = jnp.max(jnp.where(valid, val, -jnp.inf), axis=0, keepdims=True)
    max_ref[...] = jnp.broadcast_to(rowmax, max_ref.shape)


def logmel_filter_bank(x, melW, *, is_log=True, ref=1.0, amin=1e-10,
                       top_db=80.0, lhs_dtype=jnp.float32):
    """Pallas LogmelFilterBank.forward. x: (B, C, T, n_bins), melW: (n_bins, n_mels)."""
    B, C, T, K = x.shape
    Kw, N = melW.shape
    assert K == Kw, "melW first dim must match spectrogram bins"
    M = B * C * T

    # lhs: a free reshape, no padded copy.  Optionally bf16 to halve HBM reads.
    x2 = x.reshape(M, K).astype(lhs_dtype)

    # Only the tiny weight gets padded (lane-dense N for unmasked vst).
    N_pad = _round_up(N, 128)
    w2 = melW.astype(jnp.float32)
    if N_pad != N:
        w2 = jnp.zeros((K, N_pad), jnp.float32).at[:, :N].set(w2)

    # ---- tiling -------------------------------------------------------------
    tm = min(512, _round_up(M, 8))
    itemsize = jnp.dtype(lhs_dtype).itemsize
    # Shrink tm only if double-buffered lhs tiles + resident weight + output
    # tiles would not fit comfortably in scoped VMEM.
    while tm > 64 and (2 * tm * K * itemsize + 2 * K * N_pad * 4
                       + 2 * tm * N_pad * 4) > (48 << 20):
        tm = _round_up(max(tm // 2, 8), 8)
    grid_m = pl.cdiv(M, tm)

    vmem_needed = (2 * tm * K * itemsize + 2 * K * N_pad * 4
                   + 2 * tm * N_pad * 4 + 2 * 8 * N_pad * 4)
    # >= 32 MiB so v5e's 16 MiB default is never the limiter; <= 56 MiB so we
    # stay under v7x's 64 MiB physical VMEM with headroom.
    vmem_limit = int(min(max(vmem_needed + (8 << 20), 32 << 20), 56 << 20))

    db_offset = 10.0 * math.log10(max(amin, ref))
    kernel = functools.partial(_logmel_kernel, amin=float(amin),
                               db_offset=float(db_offset), is_log=is_log,
                               tm=tm, m_total=M)

    log_spec, maxes = pl.pallas_call(
        kernel,
        out_shape=(jax.ShapeDtypeStruct((M, N_pad), jnp.float32),
                   jax.ShapeDtypeStruct((8 * grid_m, N_pad), jnp.float32)),
        grid=(grid_m,),
        in_specs=[
            # Full-K lhs block; partial last M block handled by Pallas masking.
            pl.BlockSpec((tm, K), lambda i: (i, 0)),
            # Constant block index -> weight DMA'd once, VMEM-resident.
            pl.BlockSpec((K, N_pad), lambda i: (0, 0)),
        ],
        out_specs=(
            pl.BlockSpec((tm, N_pad), lambda i: (i, 0)),
            pl.BlockSpec((8, N_pad), lambda i: (i, 0)),
        ),
        compiler_params=pltpu.CompilerParams(
            dimension_semantics=("parallel",),
            vmem_limit_bytes=vmem_limit),
    )(x2, w2)

    out = log_spec if N_pad == N else log_spec[:, :N]
    if is_log and top_db is not None:
        if top_db < 0:
            raise ValueError("top_db must be non-negative")
        gmax = jnp.max(maxes)                       # tiny (8*grid_m, N_pad) reduce
        out = jnp.maximum(out, gmax - top_db)       # fused with slice/reshape by XLA
    return out.reshape(B, C, T, N)


def reference_logmel(x, melW, *, is_log=True, ref=1.0, amin=1e-10, top_db=80.0):
    """Pure-JAX reference matching the PyTorch module semantics."""
    mel = jnp.einsum('bctk,kn->bctn', x.astype(jnp.float32),
                     melW.astype(jnp.float32))
    if not is_log:
        return mel
    log_spec = 10.0 * jnp.log10(jnp.maximum(mel, amin))
    log_spec = log_spec - 10.0 * math.log10(max(amin, ref))
    if top_db is not None:
        log_spec = jnp.maximum(log_spec, jnp.max(log_spec) - top_db)
    return log_spec


if __name__ == "__main__":
    # Small shapes consistent with the module: (B, C, T, n_fft//2+1) spectrogram.
    # T chosen so M = B*C*T = 600 exercises two M tiles incl. a partial last
    # tile (masked per-tile max path).
    B, C, T = 2, 1, 300
    n_bins, n_mels = 256, 64

    key = jax.random.PRNGKey(0)
    kx, kw = jax.random.split(key)

    # Non-negative "power spectrogram" spanning a wide dynamic range so the
    # top_db clamp path is actually exercised.
    row_scale = (10.0 ** (-(jnp.arange(T, dtype=jnp.float32) % 16.0)))[None, None, :, None]
    x = jax.random.uniform(kx, (B, C, T, n_bins), dtype=jnp.float32) * row_scale

    # Deterministic stand-in for librosa.filters.mel(...).T (non-negative).
    # TODO(synk): real librosa mel weights are built host-side; any non-negative
    # (n_bins, n_mels) matrix exercises identical kernel math.
    melW = jax.random.uniform(kw, (n_bins, n_mels), dtype=jnp.float32) / n_bins

    out = logmel_filter_bank(x, melW, is_log=True, ref=1.0, amin=1e-10,
                             top_db=80.0)
    out = jax.block_until_ready(out)

    ref_out = reference_logmel(x, melW, is_log=True, ref=1.0, amin=1e-10,
                               top_db=80.0)
    assert out.shape == (B, C, T, n_mels) and out.dtype == jnp.float32
    assert jnp.allclose(out, ref_out, rtol=1e-3, atol=2e-2), (
        "max abs err = %f" % float(jnp.max(jnp.abs(out - ref_out))))

    print("KERNEL_OK")
</pallas_src>

<mosaic_0001>
module attributes {stable_mosaic.version = 11 : i64} {
  func.func @_logmel_kernel(%arg0: i32, %arg1: memref<512x256xf32, #tpu.memory_space<vmem>>, %arg2: memref<256x128xf32, #tpu.memory_space<vmem>>, %arg3: memref<512x128xf32, #tpu.memory_space<vmem>>, %arg4: memref<8x128xf32, #tpu.memory_space<vmem>>) attributes {dimension_semantics = [#tpu.dimension_semantics<parallel>], iteration_bounds = array<i64: 2>, scalar_prefetch = 0 : i64, scratch_operands = 0 : i64, tpu.core_type = #tpu.core_type<tc>, window_params = [{transform_indices = @transform_0, window_bounds = array<i64: 512, 256>}, {pipeline_mode = #tpu.pipeline_mode<synchronous>, transform_indices = @transform_1, window_bounds = array<i64: 256, 128>}, {transform_indices = @transform_2, window_bounds = array<i64: 512, 128>}, {transform_indices = @transform_3, window_bounds = array<i64: 8, 128>}]} {
    %c0 = arith.constant 0 : index
    %c0_0 = arith.constant 0 : index
    %0 = vector.load %arg1[%c0, %c0_0] : memref<512x256xf32, #tpu.memory_space<vmem>>, vector<512x256xf32>
    %c0_1 = arith.constant 0 : index
    %c0_2 = arith.constant 0 : index
    %1 = vector.load %arg2[%c0_1, %c0_2] : memref<256x128xf32, #tpu.memory_space<vmem>>, vector<256x128xf32>
    %cst = arith.constant dense<0.000000e+00> : vector<512x128xf32>
    %2 = tpu.matmul %0, %1, %cst {dimension_numbers = #tpu.dot_dimension_numbers<[1], [0], [0], [1], [0, 0, 1, 1], [], []>} : vector<512x256xf32>, vector<256x128xf32>, vector<512x128xf32> -> vector<512x128xf32>
    %cst_3 = arith.constant 1.000000e-10 : f32
    %3 = vector.broadcast %cst_3 : f32 to vector<512x128xf32>
    %4 = arith.maximumf %2, %3 : vector<512x128xf32>
    %5 = math.log %4 : vector<512x128xf32>
    %cst_4 = arith.constant 4.34294462 : f32
    %6 = vector.broadcast %cst_4 : f32 to vector<512x128xf32>
    %7 = arith.mulf %5, %6 : vector<512x128xf32>
    %cst_5 = arith.constant 0.000000e+00 : f32
    %8 = vector.broadcast %cst_5 : f32 to vector<512x128xf32>
    %9 = arith.subf %7, %8 : vector<512x128xf32>
    %c0_6 = arith.constant 0 : index
    %c0_7 = arith.constant 0 : index
    %10 = vector.load %arg3[%c0_6, %c0_7] : memref<512x128xf32, #tpu.memory_space<vmem>>, vector<512x128xf32>
    tpu.vector_store %arg3[%c0_6, %c0_7], %9 {strides = array<i32>} : memref<512x128xf32, #tpu.memory_space<vmem>>, vector<512x128xf32>,
    %11 = tpu.iota {dimensions = array<i32: 0>} : vector<512x128xi32>
    %c512_i32 = arith.constant 512 : i32
    %12 = arith.muli %arg0, %c512_i32 : i32
    %c600_i32 = arith.constant 600 : i32
    %13 = arith.subi %c600_i32, %12 : i32
    %14 = vector.broadcast %13 : i32 to vector<512x128xi32>
    %15 = arith.cmpi slt, %11, %14 : vector<512x128xi32>
    %cst_8 = arith.constant 0xFF800000 : f32
    %16 = vector.broadcast %cst_8 : f32 to vector<512x128xf32>
    %17 = arith.select %15, %9, %16 : vector<512x128xi1>, vector<512x128xf32>
    %cst_9 = arith.constant dense<0xFF800000> : vector<128xf32>
    %18 = vector.multi_reduction <maximumf>, %17, %cst_9 [0] : vector<512x128xf32> to vector<128xf32>
    %19 = vector.shape_cast %18 : vector<128xf32> to vector<1x128xf32>
    %20 = vector.shape_cast %19 : vector<1x128xf32> to vector<1x128xf32>
    %21 = vector.broadcast %20 : vector<1x128xf32> to vector<8x128xf32>
    %c0_10 = arith.constant 0 : index
    %c0_11 = arith.constant 0 : index
    %22 = vector.load %arg4[%c0_10, %c0_11] : memref<8x128xf32, #tpu.memory_space<vmem>>, vector<8x128xf32>
    tpu.vector_store %arg4[%c0_10, %c0_11], %21 {strides = array<i32>} : memref<8x128xf32, #tpu.memory_space<vmem>>, vector<8x128xf32>,
    return
  }
  func.func @transform_0(%arg0: i32) -> (i32, i32) {
    %c0_i32 = arith.constant 0 : i32
    %c0_i32_0 = arith.constant 0 : i32
    return %arg0, %c0_i32 : i32, i32
  }
  func.func @transform_1(%arg0: i32) -> (i32, i32) {
    %c0_i32 = arith.constant 0 : i32
    %c0_i32_0 = arith.constant 0 : i32
    %c0_i32_1 = arith.constant 0 : i32
    return %c0_i32, %c0_i32_0 : i32, i32
  }
  func.func @transform_2(%arg0: i32) -> (i32, i32) {
    %c0_i32 = arith.constant 0 : i32
    %c0_i32_0 = arith.constant 0 : i32
    return %arg0, %c0_i32 : i32, i32
  }
  func.func @transform_3(%arg0: i32) -> (i32, i32) {
    %c0_i32 = arith.constant 0 : i32
    %c0_i32_0 = arith.constant 0 : i32
    return %arg0, %c0_i32 : i32, i32
  }
}

</mosaic_0001>

<bundles_post_ra>
// kernel: tpu_custom_call.1
= control target key start
LH: loop header
LB: loop body
LE: loop exit
PB: predicated region body
PF: predicated region fallthrough
CT: control target
= control target key end

     0   :  { %9 = vsyncpa [#allocation3], 0  ;;  %s2898_s0 = inlined_call_operand.hbm [shape: f32[600,256], index: 0, kind: input, shape index: {}]   ;;  %s2899_s1 = inlined_call_operand.hbm [shape: f32[256,128], index: 1, kind: input, shape index: {}]   ;;  %s2900_s2 = inlined_call_operand.hbm [shape: f32[600,128], index: 2, kind: output, shape index: {0}]   ;;  %s2901_s3 = inlined_call_operand.hbm [shape: f32[16,128], index: 3, kind: output, shape index: {1}]  }
   0x1   :  { %11 = vsyncpa [#allocation3 + $0x1], 0 }
   0x2   :  { %12 = vsyncpa [#allocation6], 0 }
   0x3   :  { %13 = vsyncpa [#allocation4], 0 }
   0x4   :  { %15 = vsyncpa [#allocation4 + $0x1], 0 }
   0x5   :  { %16 = vsyncpa [#allocation9], 0 }
   0x6   :  { %18 = vsyncpa [#allocation9 + $0x1], 0  ;;  %s1989_s12 = smov 0   ;;  %s1991_s13 = smov 0  }
   0x7   :  { %s1993_s14 = smov 0   ;;  %s1995_s15 = smov 0  }
   0x8 LB: > { %s2010_s16 = sadd.s32 4294967295, %s1956_s15   ;;  %s1518_s17 = sadd.s32 4294967294, %s1956_s15   ;;  %s1956_s15 = sphi %s1995_s15, %s2918_s15   ;;  %s1952_s14 = sphi %s1993_s14, %s2917_s14   ;;  %s1948_s13 = sphi %s1991_s13, %s2916_s13   ;;  %s1944_s12 = sphi %s1989_s12, %s2915_s12  }
   0x9   : > { %s2014_s18 = sadd.s32 1, %s1956_s15   ;;  %s31_s19 = sadd.s32 1, %s1952_s14 }
   0xa   : > { %s28_s20 = ssub.s32 %s1956_s15, %s2014_s18  ;;  %p38_p0 = scmp.ne.s32.totalorder %s1952_s14, %s1948_s13 }
   0xb   : > { %p29_p1 = scmp.eq.s32.totalorder %s28_s20, 0  ;;  %p39_p2 = scmp.eq.s32.totalorder %s1956_s15, 0 }
   0xc   : > { %p44_p3 = scmp.ne.s32.totalorder %s1948_s13, %s1944_s12  ;;  %p45_p4 = scmp.eq.s32.totalorder %s2010_s16, 0 }
   0xd   : > { %s2026_s21 = scalar_select %p29_p1, %s1952_s14, %s31_s19  }
   0xe   : > { %p2028_p5 = por %p39_p2, %p38_p0  ;;  %p2034_p6 = por %p45_p4, %p44_p3 }
   0xf   : > { %p89_p7 = scmp.eq.s32.totalorder %s2010_s16, 1  ;;  %p95_p8 = scmp.eq.s32.totalorder %s1518_s17, 1 }
  0x10   : > { %s2906_s23 = scalar_select %p2034_p6, 1, 0 }
  0x11   : > { %p1519_p9 = scmp.ge.s32.totalorder %s1956_s15, 1  ;;  %p128_p10 = scmp.lt.s32.totalorder %s1956_s15, 3 }
  0x12   : > { %p2041_p11 = por %p89_p7, %p38_p0  ;;  %p2045_p12 = por %p95_p8, %p44_p3 }
  0x13   : > { %p2049_p13 = pnand %p1519_p9, %p128_p10  ;;  %s1958_s27 = smov [#allocation5]  }
  0x14   : > { %s2907_s24 = scalar_select %p2041_p11, 1, 0 }
  0x15   : > { %s2908_s25 = scalar_select %p2045_p12, 1, 0 }
  0x16   : > { %p1624_p1 = pneg %p2049_p13  ;;  %s140_s28 = sshll.u32 %s1958_s27, 4  ;;  %s141_s28 = int_to_ptr.vmem [resolvable:$true] %s140_s28 }
  0x17   : > { %s1817_s29 = scalar_lea.vmem %s141_s28, 4096  ;;  %p1825_p8 = scmp.lt.s32.totalorder %s141_s28, %s141_s28 }
  0x18   : > { %p1625_p2 = pnand %p1624_p1, %p45_p4  ;;  %p1818_p7 = scmp.ne.s32.totalorder %s141_s28, %s1817_s29 }
  0x19   : > { %p1826_p6 = scmp.lt.s32.totalorder %s1817_s29, %s1817_s29 }
  0x1a   : > { %p1808_p0 = pneg %p1625_p2 }
  0x1b   : > { %p1827_p12 = por %p1826_p6, %p1825_p8 }
  0x1c   : > { %p1820_p11 = pnand %p1818_p7, %p1808_p0 }
  0x1e   : > { %p1821_p3 = pneg %p1820_p11 }
  0x20   : > { %p1828_p9 = pnand %p1827_p12, %p1821_p3 }
  0x22   : > { %1831 = shalt.err (!%p1828_p9)
}
  0x23   : > { %s1959_s30 = smov 128   ;;  %s1960_s4 = smov 8  }
  0x24   : > { %1627 = dma.hbm_to_vmem [thread:$0]  (!%p1625_p2), %s2899_s1, 4096, %s141_s28, [#allocation6], %s1959_s30, %s1959_s30, %s1960_s4  }
  0x25   : > { %p2904_p10 = scmp.ge.s32.totalorder %s1956_s15, 2 }
  0x27   : > { %150 = sbr.rel (%p2904_p10) target bundleno = 76 (0x4c), region = 20 }
  0x2c   : > { %153 = sbr.rel (!%p2028_p5) target bundleno = 76 (0x4c), region = 24  ;;  %s154_s7 = sand.u32 (%p2028_p5), 1, %s1952_s14  }
  0x2d   : > { %s1523_s8 = sshll.u32 (%p2028_p5), %s1956_s15, 6  ;;  %s1522_s9 = sshll.u32 (%p2028_p5), %s154_s7, 10 }
  0x2e   : > { %s160_s10 = ssub.s32 (%p2028_p5), 75, %s1523_s8  ;;  %s2070_s19 = scalar_lea.sflag (%p2028_p5), [#allocation3], %s154_s7 }
  0x2f   : > { %p161_p6 = scmp.lt.s32.totalorder (%p2028_p5), %s160_s10, 64  ;;  %s158_s20 = scalar_lea.vmem (%p2028_p5), [#allocation2], %s1522_s9 }
  0x31   : > { %s2920_s10 = smov (!%p161_p6, %s160_s10), 64 }
  0x32   : > { %s2067_s11 = sshll.u32 %s2920_s10, 8 }
  0x33   : > { %s166_s17 = ssub.s32 16384, %s2067_s11 }
  0x34   : > { %167 = vsyncadd %s2070_s19, %s166_s17  ;;  %p1526_p5 = scmp.ne.s32.totalorder %s2067_s11, 0  ;;  %s1550_s22 = sshll.u32 %s1956_s15, 14 }
  0x35   : > { %s2078_s29 = scalar_lea.hbm %s2898_s0, %s1550_s22  ;;  %s173_s30 = sshll.u32 %s158_s20, 4  ;;  %s2080_s30 = int_to_ptr.vmem [resolvable:$true] %s173_s30 }
  0x36   : > { %s1832_s4 = scalar_lea.hbm %s2078_s29, %s2067_s11  ;;  %s1836_s7 = scalar_lea.hbm %s2898_s0, 19200 }
  0x37   : > { %p1833_p11 = scmp.ne.s32.totalorder %s2078_s29, %s1832_s4  ;;  %p1837_p2 = scmp.lt.s32.totalorder %s2078_s29, %s2898_s0 }
  0x38   : > { %p1838_p0 = scmp.lt.s32.totalorder %s1836_s7, %s1832_s4 }
  0x39   : > { %p1834_p12 = pnand %p1833_p11, %p1526_p5 }
  0x3a   : > { %p1839_p7 = por %p1838_p0, %p1837_p2 }
  0x3b   : > { %p1835_p1 = pneg %p1834_p12 }
  0x3d   : > { %p1840_p3 = pnand %p1839_p7, %p1835_p1 }
  0x3f   : > { %1843 = shalt.err (!%p1840_p3)
}
  0x40   : > { %s1844_s10 = scalar_lea.vmem %s2080_s30, %s2067_s11  ;;  %s1961_s17 = smov [#allocation2]  }
  0x41   : > { %p1845_p8 = scmp.ne.s32.totalorder %s2080_s30, %s1844_s10  ;;  %s1848_s20 = sshll.u32 %s1961_s17, 4  ;;  %s1849_s20 = int_to_ptr.vmem [resolvable:$false] %s1848_s20 }
  0x42   : > { %s1850_s22 = scalar_lea.vmem %s1849_s20, 32768  ;;  %p1851_p11 = scmp.lt.s32.totalorder %s2080_s30, %s1849_s20 }
  0x43   : > { %p1846_p9 = pnand %p1845_p8, %p1526_p5  ;;  %p1852_p12 = scmp.lt.s32.totalorder %s1850_s22, %s1844_s10 }
  0x45   : > { %p1847_p6 = pneg %p1846_p9  ;;  %p1853_p10 = por %p1852_p12, %p1851_p11 }
  0x47   : > { %p1854_p2 = pnand %p1853_p10, %p1847_p6 }
  0x49   : > { %1857 = shalt.err (!%p1854_p2)
}
  0x4a   : > { %s1962_s27 = smov 256   ;;  %s1963_s28 = smov 16  }
  0x4b   : > { %179 = dma.hbm_to_vmem [thread:$0]  (%p1526_p5), %s2078_s29, %s2067_s11, %s2080_s30, %s2070_s19, %s1962_s27, %s1962_s27, %s1963_s28  }
  0x4c PF: > { %185 = sbr.rel (%p2049_p13) target bundleno = 564 (0x234), region = 28  ;;  %s2109_s4 = sand.u32 (!%p2049_p13), 1, %s1948_s13  }
  0x4d   : > { %s1532_s5 = sshll.u32 (!%p2049_p13), %s2109_s4, 10  ;;  %s188_s6 = scalar_lea.sflag (!%p2049_p13), [#allocation3], %s2109_s4 }
  0x4e   : > { %s2113_s7 = scalar_lea.vmem (!%p2049_p13), [#allocation2], %s1532_s5  ;;  %p2910_p10 = scmp.ne.s32.totalorder (!%p2049_p13), %s2906_s23, 0 }
  0x51   : > { %1927 = dma.done.wait (%p2910_p10), %s188_s6, 16384  }
  0x52   : > { %1929 = vsyncadd (%p2910_p10), %s188_s6, 4294950912 }
  0x53   : > { %1931 = dma.done.wait (%p45_p4), [#allocation6], 4096  }
  0x54   : > { %1933 = vsyncadd (%p45_p4), [#allocation6], 4294963200  ;;  %v1964_v0 = vmov 0.0   ;;  %v377_v1 = vld [vmem:[#allocation5 + $0x78] sm:$0xff]  ;;  %v376_v2 = vld [vmem:[#allocation5 + $0x70] sm:$0xff]  ;;  %s1534_s23 = sshll.u32 %s2109_s4, 9 }
  0x55   : > { %394 = vmatprep.subr.mxu0 %v1964_v0  ;;  %1552 = vmatprep.subr.mxu1 %v1964_v0  ;;  %v375_v3 = vld [vmem:[#allocation5 + $0x68] sm:$0xff]  ;;  %v374_v4 = vld [vmem:[#allocation5 + $0x60] sm:$0xff]  ;;  %v373_v5 = vld [vmem:[#allocation5 + $0x58] sm:$0xff]  ;;  %s1536_s26 = sshll.u32 %s2010_s16, 9  ;;  %s2319_s11 = scalar_lea.vmem [#allocation7], %s1534_s23 }
  0x56   : > { %395 = vmatpush1.msra.mxu0 %v377_v1  ;;  %1584 = vmatpush1.msra.mxu1 %v377_v1  ;;  %v372_v6 = vld [vmem:[#allocation5 + $0x50] sm:$0xff]  ;;  %v371_v7 = vld [vmem:[#allocation5 + $0x48] sm:$0xff]  ;;  %v370_v8 = vld [vmem:[#allocation5 + $0x40] sm:$0xff]  ;;  %s1165_s19 = ssub.s32 600, %s1536_s26  ;;  %s1535_s29 = sshll.u32 %s2109_s4, 3 }
  0x57   : > { %396 = vmatprep.subr.mxu0 %v1964_v0  ;;  %1553 = vmatprep.subr.mxu1 %v1964_v0  ;;  %v369_v9 = vld [vmem:[#allocation5 + $0x38] sm:$0xff]  ;;  %v368_v10 = vld [vmem:[#allocation5 + $0x30] sm:$0xff]  ;;  %v367_v11 = vld [vmem:[#allocation5 + $0x28] sm:$0xff]  ;;  %s2813_s30 = scalar_lea.vmem [#allocation8], %s1535_s29  ;;  %s1366_s8 = scalar_lea.sflag [#allocation4], %s2109_s4 }
  0x58   : > { %397 = vmatpush1.msra.mxu0 %v376_v2  ;;  %1585 = vmatpush1.msra.mxu1 %v376_v2  ;;  %v366_v12 = vld [vmem:[#allocation5 + $0x20] sm:$0xff]  ;;  %v365_v13 = vld [vmem:[#allocation5 + $0x18] sm:$0xff]  ;;  %v364_v14 = vld [vmem:[#allocation5 + $0x10] sm:$0xff]  ;;  %s1371_s9 = scalar_lea.sflag [#allocation9], %s2109_s4  ;;  %p2911_p4 = scmp.ne.s32.totalorder %s2907_s24, 0 }
  0x59   : > { %398 = vmatprep.subr.mxu0 %v1964_v0  ;;  %1554 = vmatprep.subr.mxu1 %v1964_v0  ;;  %v363_v15 = vld [vmem:[#allocation5 + $0x8] sm:$0xff]  ;;  %v362_v16 = vld [vmem:[#allocation5] sm:$0xff]  ;;  %v393_v17 = vld [vmem:[#allocation5 + $0xf8] sm:$0xff]  ;;  %s1539_s10 = sshll.u32 (%p2911_p4), %s2010_s16, 6 }
  0x5a   : > { %399 = vmatpush1.msra.mxu0 %v375_v3  ;;  %1586 = vmatpush1.msra.mxu1 %v375_v3  ;;  %v392_v18 = vld [vmem:[#allocation5 + $0xf0] sm:$0xff]  ;;  %v391_v19 = vld [vmem:[#allocation5 + $0xe8] sm:$0xff]  ;;  %v390_v20 = vld [vmem:[#allocation5 + $0xe0] sm:$0xff]  ;;  %s1379_s17 = ssub.s32 (%p2911_p4), 75, %s1539_s10 }
  0x5b   : > { %400 = vmatprep.subr.mxu0 %v1964_v0  ;;  %1555 = vmatprep.subr.mxu1 %v1964_v0  ;;  %v389_v21 = vld [vmem:[#allocation5 + $0xd8] sm:$0xff]  ;;  %v388_v22 = vld [vmem:[#allocation5 + $0xd0] sm:$0xff]  ;;  %v387_v23 = vld [vmem:[#allocation5 + $0xc8] sm:$0xff]  ;;  %p1380_p13 = scmp.lt.s32.totalorder (%p2911_p4), %s1379_s17, 64 }
  0x5c   : > { %401 = vmatpush1.msra.mxu0 %v374_v4  ;;  %1587 = vmatpush1.msra.mxu1 %v374_v4  ;;  %v386_v24 = vld [vmem:[#allocation5 + $0xc0] sm:$0xff]  ;;  %v385_v25 = vld [vmem:[#allocation5 + $0xb8] sm:$0xff]  ;;  %v235_v26 = vld [vmem:[%s2113_s7 + $0x8] sm:$0xff] }
  0x5d   : > { %402 = vmatprep.subr.mxu0 %v1964_v0  ;;  %1556 = vmatprep.subr.mxu1 %v1964_v0  ;;  %v384_v27 = vld [vmem:[#allocation5 + $0xb0] sm:$0xff]  ;;  %v383_v28 = vld [vmem:[#allocation5 + $0xa8] sm:$0xff]  ;;  %v382_v29 = vld [vmem:[#allocation5 + $0xa0] sm:$0xff] }
  0x5e   : > { %403 = vmatpush1.msra.mxu0 %v373_v5  ;;  %1588 = vmatpush1.msra.mxu1 %v373_v5  ;;  %v381_v30 = vld [vmem:[#allocation5 + $0x98] sm:$0xff]  ;;  %v380_v31 = vld [vmem:[#allocation5 + $0x90] sm:$0xff]  ;;  %v379_v32 = vld [vmem:[#allocation5 + $0x88] sm:$0xff] }
  0x5f   : > { %404 = vmatprep.subr.mxu0 %v1964_v0  ;;  %1557 = vmatprep.subr.mxu1 %v1964_v0  ;;  %v378_v33 = vld [vmem:[#allocation5 + $0x80] sm:$0xff]  ;;  %v237_v35 = vld [vmem:[%s2113_s7 + $0x18] sm:$0xff]  ;;  %v299_v36 = vld [vmem:[%s2113_s7 + $0x208] sm:$0xff] }
  0x60   : > { %405 = vmatpush1.msra.mxu0 %v372_v6  ;;  %1589 = vmatpush1.msra.mxu1 %v372_v6  ;;  %v234_v34 = vld [vmem:[%s2113_s7] sm:$0xff]  ;;  %v301_v38 = vld [vmem:[%s2113_s7 + $0x218] sm:$0xff]  ;;  %v236_v39 = vld [vmem:[%s2113_s7 + $0x10] sm:$0xff] }
  0x61   : > { %406 = vmatprep.subr.mxu0 %v1964_v0  ;;  %1558 = vmatprep.subr.mxu1 %v1964_v0  ;;  %v298_v37 = vld [vmem:[%s2113_s7 + $0x200] sm:$0xff]  ;;  %v239_v40 = vld [vmem:[%s2113_s7 + $0x28] sm:$0xff]  ;;  %v300_v41 = vld [vmem:[%s2113_s7 + $0x210] sm:$0xff] }
  0x62   : > { %407 = vmatpush1.msra.mxu0 %v371_v7  ;;  %1590 = vmatpush1.msra.mxu1 %v371_v7  ;;  %v303_v42 = vld [vmem:[%s2113_s7 + $0x228] sm:$0xff]  ;;  %v238_v43 = vld [vmem:[%s2113_s7 + $0x20] sm:$0xff]  ;;  %v241_v44 = vld [vmem:[%s2113_s7 + $0x38] sm:$0xff] }
  0x63   : > { %408 = vmatprep.subr.mxu0 %v1964_v0  ;;  %1559 = vmatprep.subr.mxu1 %v1964_v0  ;;  %v302_v45 = vld [vmem:[%s2113_s7 + $0x220] sm:$0xff]  ;;  %v305_v46 = vld [vmem:[%s2113_s7 + $0x238] sm:$0xff]  ;;  %v240_v47 = vld [vmem:[%s2113_s7 + $0x30] sm:$0xff] }
  0x64   : > { %409 = vmatpush1.msra.mxu0 %v370_v8  ;;  %1591 = vmatpush1.msra.mxu1 %v370_v8  ;;  %v243_v48 = vld [vmem:[%s2113_s7 + $0x48] sm:$0xff]  ;;  %v304_v49 = vld [vmem:[%s2113_s7 + $0x230] sm:$0xff]  ;;  %v242_v51 = vld [vmem:[%s2113_s7 + $0x40] sm:$0xff] }
  0x65   : > { %410 = vmatprep.subr.mxu0 %v1964_v0  ;;  %1560 = vmatprep.subr.mxu1 %v1964_v0  ;;  %v307_v50 = vld [vmem:[%s2113_s7 + $0x248] sm:$0xff]  ;;  %v245_v52 = vld [vmem:[%s2113_s7 + $0x58] sm:$0xff]  ;;  %v306_v53 = vld [vmem:[%s2113_s7 + $0x240] sm:$0xff] }
  0x66   : > { %411 = vmatpush1.msra.mxu0 %v369_v9  ;;  %1592 = vmatpush1.msra.mxu1 %v369_v9  ;;  %v309_v54 = vld [vmem:[%s2113_s7 + $0x258] sm:$0xff]  ;;  %v244_v55 = vld [vmem:[%s2113_s7 + $0x50] sm:$0xff]  ;;  %v247_v56 = vld [vmem:[%s2113_s7 + $0x68] sm:$0xff] }
  0x67   : > { %412 = vmatprep.subr.mxu0 %v1964_v0  ;;  %1561 = vmatprep.subr.mxu1 %v1964_v0  ;;  %v308_v57 = vld [vmem:[%s2113_s7 + $0x250] sm:$0xff]  ;;  %v311_v58 = vld [vmem:[%s2113_s7 + $0x268] sm:$0xff]  ;;  %v246_v59 = vld [vmem:[%s2113_s7 + $0x60] sm:$0xff] }
  0x68   : > { %413 = vmatpush1.msra.mxu0 %v368_v10  ;;  %1593 = vmatpush1.msra.mxu1 %v368_v10  ;;  %v249_v60 = vld [vmem:[%s2113_s7 + $0x78] sm:$0xff]  ;;  %v310_v61 = vld [vmem:[%s2113_s7 + $0x260] sm:$0xff]  ;;  %v248_v63 = vld [vmem:[%s2113_s7 + $0x70] sm:$0xff] }
  0x69   : > { %414 = vmatprep.subr.mxu0 %v1964_v0  ;;  %1562 = vmatprep.subr.mxu1 %v1964_v0  ;;  %v313_v62 = vld [vmem:[%s2113_s7 + $0x278] sm:$0xff]  ;;  %v312_v1 = vld [vmem:[%s2113_s7 + $0x270] sm:$0xff]  ;;  %v315_v2 = vld [vmem:[%s2113_s7 + $0x288] sm:$0xff] }
  0x6a   : > { %415 = vmatpush1.msra.mxu0 %v367_v11  ;;  %1594 = vmatpush1.msra.mxu1 %v367_v11  ;;  %v250_v3 = vld [vmem:[%s2113_s7 + $0x80] sm:$0xff]  ;;  %v253_v4 = vld [vmem:[%s2113_s7 + $0x98] sm:$0xff]  ;;  %v252_v7 = vld [vmem:[%s2113_s7 + $0x90] sm:$0xff] }
  0x6b   : > { %416 = vmatprep.subr.mxu0 %v1964_v0  ;;  %1563 = vmatprep.subr.mxu1 %v1964_v0  ;;  %v314_v5 = vld [vmem:[%s2113_s7 + $0x280] sm:$0xff]  ;;  %v317_v6 = vld [vmem:[%s2113_s7 + $0x298] sm:$0xff]  ;;  %v255_v8 = vld [vmem:[%s2113_s7 + $0xa8] sm:$0xff] }
  0x6c   : > { %417 = vmatpush1.msra.mxu0 %v366_v12  ;;  %1595 = vmatpush1.msra.mxu1 %v366_v12  ;;  %v316_v9 = vld [vmem:[%s2113_s7 + $0x290] sm:$0xff]  ;;  %v319_v10 = vld [vmem:[%s2113_s7 + $0x2a8] sm:$0xff]  ;;  %v254_v11 = vld [vmem:[%s2113_s7 + $0xa0] sm:$0xff] }
  0x6d   : > { %418 = vmatprep.subr.mxu0 %v1964_v0  ;;  %1564 = vmatprep.subr.mxu1 %v1964_v0  ;;  %v257_v12 = vld [vmem:[%s2113_s7 + $0xb8] sm:$0xff] }
  0x6e   : > { %419 = vmatpush1.msra.mxu0 %v365_v13  ;;  %1596 = vmatpush1.msra.mxu1 %v365_v13  ;;  %v318_v13 = vld [vmem:[%s2113_s7 + $0x2a0] sm:$0xff] }
  0x6f   : > { %420 = vmatprep.subr.mxu0 %v1964_v0  ;;  %1565 = vmatprep.subr.mxu1 %v1964_v0 }
  0x70   : > { %421 = vmatpush1.msra.mxu0 %v364_v14  ;;  %1597 = vmatpush1.msra.mxu1 %v364_v14  ;;  %v321_v14 = vld [vmem:[%s2113_s7 + $0x2b8] sm:$0xff] }
  0x71   : > { %422 = vmatprep.subr.mxu0 %v1964_v0  ;;  %1566 = vmatprep.subr.mxu1 %v1964_v0 }
  0x72   : > { %423 = vmatpush1.msra.mxu0 %v363_v15  ;;  %1598 = vmatpush1.msra.mxu1 %v363_v15  ;;  %v256_v15 = vld [vmem:[%s2113_s7 + $0xb0] sm:$0xff] }
  0x73   : > { %424 = vmatprep.subr.mxu0 %v1964_v0  ;;  %1567 = vmatprep.subr.mxu1 %v1964_v0 }
  0x74   : > { %425 = vmatpush1.msra.mxu0 %v362_v16  ;;  %1599 = vmatpush1.msra.mxu1 %v362_v16  ;;  %v259_v16 = vld [vmem:[%s2113_s7 + $0xc8] sm:$0xff] }
  0x75   : > { %426 = vmatprep.subr.mxu0 %v1964_v0  ;;  %1568 = vmatprep.subr.mxu1 %v1964_v0 }
  0x76   : > { %427 = vmatpush2.msra.mxu0 %v393_v17  ;;  %1600 = vmatpush2.msra.mxu1 %v393_v17  ;;  %v320_v17 = vld [vmem:[%s2113_s7 + $0x2b0] sm:$0xff] }
  0x77   : > { %428 = vmatprep.subr.mxu0 %v1964_v0  ;;  %1569 = vmatprep.subr.mxu1 %v1964_v0 }
  0x78   : > { %429 = vmatpush2.msra.mxu0 %v392_v18  ;;  %1601 = vmatpush2.msra.mxu1 %v392_v18  ;;  %v323_v18 = vld [vmem:[%s2113_s7 + $0x2c8] sm:$0xff] }
  0x79   : > { %430 = vmatprep.subr.mxu0 %v1964_v0  ;;  %1570 = vmatprep.subr.mxu1 %v1964_v0 }
  0x7a   : > { %431 = vmatpush2.msra.mxu0 %v391_v19  ;;  %1602 = vmatpush2.msra.mxu1 %v391_v19  ;;  %v258_v19 = vld [vmem:[%s2113_s7 + $0xc0] sm:$0xff] }
  0x7b   : > { %432 = vmatprep.subr.mxu0 %v1964_v0  ;;  %1571 = vmatprep.subr.mxu1 %v1964_v0 }
  0x7c   : > { %433 = vmatpush2.msra.mxu0 %v390_v20  ;;  %1603 = vmatpush2.msra.mxu1 %v390_v20  ;;  %v261_v20 = vld [vmem:[%s2113_s7 + $0xd8] sm:$0xff] }
  0x7d   : > { %434 = vmatprep.subr.mxu0 %v1964_v0  ;;  %1572 = vmatprep.subr.mxu1 %v1964_v0 }
  0x7e   : > { %435 = vmatpush2.msra.mxu0 %v389_v21  ;;  %1604 = vmatpush2.msra.mxu1 %v389_v21  ;;  %v322_v21 = vld [vmem:[%s2113_s7 + $0x2c0] sm:$0xff] }
  0x7f   : > { %436 = vmatprep.subr.mxu0 %v1964_v0  ;;  %1573 = vmatprep.subr.mxu1 %v1964_v0 }
  0x80   : > { %437 = vmatpush2.msra.mxu0 %v388_v22  ;;  %1605 = vmatpush2.msra.mxu1 %v388_v22  ;;  %v325_v22 = vld [vmem:[%s2113_s7 + $0x2d8] sm:$0xff] }
  0x81   : > { %438 = vmatprep.subr.mxu0 %v1964_v0  ;;  %1574 = vmatprep.subr.mxu1 %v1964_v0 }
  0x82   : > { %439 = vmatpush2.msra.mxu0 %v387_v23  ;;  %1606 = vmatpush2.msra.mxu1 %v387_v23  ;;  %v260_v23 = vld [vmem:[%s2113_s7 + $0xd0] sm:$0xff] }
  0x83   : > { %440 = vmatprep.subr.mxu0 %v1964_v0  ;;  %1575 = vmatprep.subr.mxu1 %v1964_v0 }
  0x84   : > { %441 = vmatpush2.msra.mxu0 %v386_v24  ;;  %1607 = vmatpush2.msra.mxu1 %v386_v24  ;;  %v263_v24 = vld [vmem:[%s2113_s7 + $0xe8] sm:$0xff] }
  0x85   : > { %442 = vmatprep.subr.mxu0 %v1964_v0  ;;  %1576 = vmatprep.subr.mxu1 %v1964_v0 }
  0x86   : > { %443 = vmatpush2.msra.mxu0 %v385_v25  ;;  %1608 = vmatpush2.msra.mxu1 %v385_v25  ;;  %v324_v25 = vld [vmem:[%s2113_s7 + $0x2d0] sm:$0xff] }
  0x87   : > { %444 = vmatprep.subr.mxu0 %v1964_v0  ;;  %458 = vmatprep.mubr.f32.mxu0 %v235_v26  ;;  %v327_v26 = vld [vmem:[%s2113_s7 + $0x2e8] sm:$0xff] }
  0x88   : > { %445 = vmatpush2.msra.mxu0 %v384_v27  ;;  %1577 = vmatprep.subr.mxu1 %v1964_v0 }
  0x89   : > { %446 = vmatprep.subr.mxu0 %v1964_v0  ;;  %1609 = vmatpush2.msra.mxu1 %v384_v27  ;;  %v262_v27 = vld [vmem:[%s2113_s7 + $0xe0] sm:$0xff] }
  0x8a   : > { %447 = vmatpush2.msra.mxu0 %v383_v28  ;;  %1578 = vmatprep.subr.mxu1 %v1964_v0 }
  0x8b   : > { %448 = vmatprep.subr.mxu0 %v1964_v0  ;;  %1610 = vmatpush2.msra.mxu1 %v383_v28  ;;  %v265_v28 = vld [vmem:[%s2113_s7 + $0xf8] sm:$0xff] }
  0x8c   : > { %449 = vmatpush2.msra.mxu0 %v382_v29  ;;  %1579 = vmatprep.subr.mxu1 %v1964_v0 }
  0x8d   : > { %450 = vmatprep.subr.mxu0 %v1964_v0  ;;  %1611 = vmatpush2.msra.mxu1 %v382_v29  ;;  %v326_v29 = vld [vmem:[%s2113_s7 + $0x2e0] sm:$0xff] }
  0x8e   : > { %451 = vmatpush2.msra.mxu0 %v381_v30  ;;  %1580 = vmatprep.subr.mxu1 %v1964_v0 }
  0x8f   : > { %452 = vmatprep.subr.mxu0 %v1964_v0  ;;  %1612 = vmatpush2.msra.mxu1 %v381_v30  ;;  %v329_v30 = vld [vmem:[%s2113_s7 + $0x2f8] sm:$0xff] }
  0x90   : > { %453 = vmatpush2.msra.mxu0 %v380_v31  ;;  %1581 = vmatprep.subr.mxu1 %v1964_v0 }
  0x91   : > { %454 = vmatprep.subr.mxu0 %v1964_v0  ;;  %1613 = vmatpush2.msra.mxu1 %v380_v31  ;;  %v264_v31 = vld [vmem:[%s2113_s7 + $0xf0] sm:$0xff] }
  0x92   : > { %455 = vmatpush2.msra.mxu0 %v379_v32  ;;  %1582 = vmatprep.subr.mxu1 %v1964_v0 }
  0x93   : > { %456 = vmatprep.subr.mxu0 %v1964_v0  ;;  %1614 = vmatpush2.msra.mxu1 %v379_v32  ;;  %v267_v32 = vld [vmem:[%s2113_s7 + $0x108] sm:$0xff] }
  0x94   : > { %457 = vmatpush2.msra.mxu0 %v378_v33  ;;  %1583 = vmatprep.subr.mxu1 %v1964_v0  ;;  %v251_v0 = vld [vmem:[%s2113_s7 + $0x88] sm:$0xff] }
  0x95   : > { %459 = vmatmul.mubr.f32.vlgmr.msra.gmra.mxu0 %v234_v34  ;;  %1615 = vmatpush2.msra.mxu1 %v378_v33  ;;  %v328_v33 = vld [vmem:[%s2113_s7 + $0x2f0] sm:$0xff]  ;;  %v331_v34 = vld [vmem:[%s2113_s7 + $0x308] sm:$0xff] }
  0x96   : > { %463 = vmatprep.mubr.f32.mxu0 %v237_v35  ;;  %618 = vmatprep.mubr.f32.mxu1 %v299_v36  ;;  %v266_v35 = vld [vmem:[%s2113_s7 + $0x100] sm:$0xff]  ;;  %v269_v36 = vld [vmem:[%s2113_s7 + $0x118] sm:$0xff] }
  0x97   : > { %619 = vmatmul.mubr.f32.vlgmr.msra.gmra.mxu1 %v298_v37  ;;  %v330_v37 = vld [vmem:[%s2113_s7 + $0x300] sm:$0xff] }
  0x98   : > { %623 = vmatprep.mubr.f32.mxu1 %v301_v38  ;;  %v333_v38 = vld [vmem:[%s2113_s7 + $0x318] sm:$0xff] }
  0x99   : > { %464 = vmatmul.mubr.f32.gmra.mxu0 %v236_v39  ;;  %v268_v39 = vld [vmem:[%s2113_s7 + $0x110] sm:$0xff] }
  0x9a   : > { %468 = vmatprep.mubr.f32.mxu0 %v239_v40  ;;  %v271_v40 = vld [vmem:[%s2113_s7 + $0x128] sm:$0xff] }
  0x9b   : > { %624 = vmatmul.mubr.f32.gmra.mxu1 %v300_v41  ;;  %v332_v41 = vld [vmem:[%s2113_s7 + $0x310] sm:$0xff] }
  0x9c   : > { %628 = vmatprep.mubr.f32.mxu1 %v303_v42  ;;  %v335_v42 = vld [vmem:[%s2113_s7 + $0x328] sm:$0xff] }
  0x9d   : > { %469 = vmatmul.mubr.f32.gmra.mxu0 %v238_v43  ;;  %v270_v43 = vld [vmem:[%s2113_s7 + $0x120] sm:$0xff] }
  0x9e   : > { %473 = vmatprep.mubr.f32.mxu0 %v241_v44  ;;  %v273_v44 = vld [vmem:[%s2113_s7 + $0x138] sm:$0xff] }
  0x9f   : > { %629 = vmatmul.mubr.f32.gmra.mxu1 %v302_v45  ;;  %v334_v45 = vld [vmem:[%s2113_s7 + $0x320] sm:$0xff] }
  0xa0   : > { %633 = vmatprep.mubr.f32.mxu1 %v305_v46  ;;  %v337_v46 = vld [vmem:[%s2113_s7 + $0x338] sm:$0xff] }
  0xa1   : > { %474 = vmatmul.mubr.f32.gmra.mxu0 %v240_v47  ;;  %v272_v47 = vld [vmem:[%s2113_s7 + $0x130] sm:$0xff] }
  0xa2   : > { %478 = vmatprep.mubr.f32.mxu0 %v243_v48  ;;  %v275_v48 = vld [vmem:[%s2113_s7 + $0x148] sm:$0xff] }
  0xa3   : > { %634 = vmatmul.mubr.f32.gmra.mxu1 %v304_v49  ;;  %v336_v49 = vld [vmem:[%s2113_s7 + $0x330] sm:$0xff] }
  0xa4   : > { %638 = vmatprep.mubr.f32.mxu1 %v307_v50  ;;  %v339_v50 = vld [vmem:[%s2113_s7 + $0x348] sm:$0xff] }
  0xa5   : > { %479 = vmatmul.mubr.f32.gmra.mxu0 %v242_v51  ;;  %v274_v51 = vld [vmem:[%s2113_s7 + $0x140] sm:$0xff] }
  0xa6   : > { %483 = vmatprep.mubr.f32.mxu0 %v245_v52  ;;  %v277_v52 = vld [vmem:[%s2113_s7 + $0x158] sm:$0xff] }
  0xa7   : > { %639 = vmatmul.mubr.f32.gmra.mxu1 %v306_v53  ;;  %v338_v53 = vld [vmem:[%s2113_s7 + $0x340] sm:$0xff] }
  0xa8   : > { %643 = vmatprep.mubr.f32.mxu1 %v309_v54  ;;  %v341_v54 = vld [vmem:[%s2113_s7 + $0x358] sm:$0xff] }
  0xa9   : > { %484 = vmatmul.mubr.f32.gmra.mxu0 %v244_v55  ;;  %v276_v55 = vld [vmem:[%s2113_s7 + $0x150] sm:$0xff] }
  0xaa   : > { %488 = vmatprep.mubr.f32.mxu0 %v247_v56  ;;  %v279_v56 = vld [vmem:[%s2113_s7 + $0x168] sm:$0xff] }
  0xab   : > { %644 = vmatmul.mubr.f32.gmra.mxu1 %v308_v57  ;;  %v340_v57 = vld [vmem:[%s2113_s7 + $0x350] sm:$0xff] }
  0xac   : > { %648 = vmatprep.mubr.f32.mxu1 %v311_v58  ;;  %v343_v58 = vld [vmem:[%s2113_s7 + $0x368] sm:$0xff] }
  0xad   : > { %489 = vmatmul.mubr.f32.gmra.mxu0 %v246_v59  ;;  %v278_v59 = vld [vmem:[%s2113_s7 + $0x160] sm:$0xff] }
  0xae   : > { %493 = vmatprep.mubr.f32.mxu0 %v249_v60  ;;  %v281_v60 = vld [vmem:[%s2113_s7 + $0x178] sm:$0xff] }
  0xaf   : > { %649 = vmatmul.mubr.f32.gmra.mxu1 %v310_v61  ;;  %v342_v61 = vld [vmem:[%s2113_s7 + $0x360] sm:$0xff] }
  0xb0   : > { %653 = vmatprep.mubr.f32.mxu1 %v313_v62  ;;  %v345_v62 = vld [vmem:[%s2113_s7 + $0x378] sm:$0xff] }
  0xb1   : > { %494 = vmatmul.mubr.f32.gmra.mxu0 %v248_v63  ;;  %v280_v63 = vld [vmem:[%s2113_s7 + $0x170] sm:$0xff] }
  0xb2   : > { %498 = vmatprep.mubr.f32.mxu0 %v251_v0  ;;  %v283_v0 = vld [vmem:[%s2113_s7 + $0x188] sm:$0xff] }
  0xb3   : > { %654 = vmatmul.mubr.f32.gmra.mxu1 %v312_v1  ;;  %v344_v1 = vld [vmem:[%s2113_s7 + $0x370] sm:$0xff] }
  0xb4   : > { %658 = vmatprep.mubr.f32.mxu1 %v315_v2  ;;  %v347_v2 = vld [vmem:[%s2113_s7 + $0x388] sm:$0xff] }
  0xb5   : > { %499 = vmatmul.mubr.f32.gmra.mxu0 %v250_v3  ;;  %v282_v3 = vld [vmem:[%s2113_s7 + $0x180] sm:$0xff] }
  0xb6   : > { %503 = vmatprep.mubr.f32.mxu0 %v253_v4  ;;  %v285_v4 = vld [vmem:[%s2113_s7 + $0x198] sm:$0xff] }
  0xb7   : > { %659 = vmatmul.mubr.f32.gmra.mxu1 %v314_v5  ;;  %v346_v5 = vld [vmem:[%s2113_s7 + $0x380] sm:$0xff] }
  0xb8   : > { %663 = vmatprep.mubr.f32.mxu1 %v317_v6  ;;  %v349_v6 = vld [vmem:[%s2113_s7 + $0x398] sm:$0xff] }
  0xb9   : > { %504 = vmatmul.mubr.f32.gmra.mxu0 %v252_v7  ;;  %v284_v7 = vld [vmem:[%s2113_s7 + $0x190] sm:$0xff] }
  0xba   : > { %508 = vmatprep.mubr.f32.mxu0 %v255_v8  ;;  %v287_v8 = vld [vmem:[%s2113_s7 + $0x1a8] sm:$0xff] }
  0xbb   : > { %664 = vmatmul.mubr.f32.gmra.mxu1 %v316_v9  ;;  %v348_v9 = vld [vmem:[%s2113_s7 + $0x390] sm:$0xff] }
  0xbc   : > { %668 = vmatprep.mubr.f32.mxu1 %v319_v10  ;;  %v351_v10 = vld [vmem:[%s2113_s7 + $0x3a8] sm:$0xff] }
  0xbd   : > { %509 = vmatmul.mubr.f32.gmra.mxu0 %v254_v11  ;;  %v286_v11 = vld [vmem:[%s2113_s7 + $0x1a0] sm:$0xff] }
  0xbe   : > { %513 = vmatprep.mubr.f32.mxu0 %v257_v12  ;;  %v289_v12 = vld [vmem:[%s2113_s7 + $0x1b8] sm:$0xff] }
  0xbf   : > { %669 = vmatmul.mubr.f32.gmra.mxu1 %v318_v13  ;;  %v350_v13 = vld [vmem:[%s2113_s7 + $0x3a0] sm:$0xff] }
  0xc0   : > { %673 = vmatprep.mubr.f32.mxu1 %v321_v14  ;;  %v353_v14 = vld [vmem:[%s2113_s7 + $0x3b8] sm:$0xff] }
  0xc1   : > { %514 = vmatmul.mubr.f32.gmra.mxu0 %v256_v15  ;;  %v288_v15 = vld [vmem:[%s2113_s7 + $0x1b0] sm:$0xff] }
  0xc2   : > { %518 = vmatprep.mubr.f32.mxu0 %v259_v16  ;;  %v291_v16 = vld [vmem:[%s2113_s7 + $0x1c8] sm:$0xff] }
  0xc3   : > { %674 = vmatmul.mubr.f32.gmra.mxu1 %v320_v17  ;;  %v352_v17 = vld [vmem:[%s2113_s7 + $0x3b0] sm:$0xff] }
  0xc4   : > { %678 = vmatprep.mubr.f32.mxu1 %v323_v18  ;;  %v355_v18 = vld [vmem:[%s2113_s7 + $0x3c8] sm:$0xff] }
  0xc5   : > { %519 = vmatmul.mubr.f32.gmra.mxu0 %v258_v19  ;;  %v290_v19 = vld [vmem:[%s2113_s7 + $0x1c0] sm:$0xff] }
  0xc6   : > { %523 = vmatprep.mubr.f32.mxu0 %v261_v20  ;;  %v293_v20 = vld [vmem:[%s2113_s7 + $0x1d8] sm:$0xff] }
  0xc7   : > { %679 = vmatmul.mubr.f32.gmra.mxu1 %v322_v21  ;;  %v354_v21 = vld [vmem:[%s2113_s7 + $0x3c0] sm:$0xff] }
  0xc8   : > { %683 = vmatprep.mubr.f32.mxu1 %v325_v22  ;;  %v357_v22 = vld [vmem:[%s2113_s7 + $0x3d8] sm:$0xff] }
  0xc9   : > { %524 = vmatmul.mubr.f32.gmra.mxu0 %v260_v23  ;;  %v292_v23 = vld [vmem:[%s2113_s7 + $0x1d0] sm:$0xff] }
  0xca   : > { %528 = vmatprep.mubr.f32.mxu0 %v263_v24  ;;  %v295_v24 = vld [vmem:[%s2113_s7 + $0x1e8] sm:$0xff] }
  0xcb   : > { %684 = vmatmul.mubr.f32.gmra.mxu1 %v324_v25  ;;  %v356_v25 = vld [vmem:[%s2113_s7 + $0x3d0] sm:$0xff] }
  0xcc   : > { %688 = vmatprep.mubr.f32.mxu1 %v327_v26  ;;  %v359_v26 = vld [vmem:[%s2113_s7 + $0x3e8] sm:$0xff] }
  0xcd   : > { %529 = vmatmul.mubr.f32.gmra.mxu0 %v262_v27  ;;  %v294_v27 = vld [vmem:[%s2113_s7 + $0x1e0] sm:$0xff] }
  0xce   : > { %533 = vmatprep.mubr.f32.mxu0 %v265_v28  ;;  %v297_v28 = vld [vmem:[%s2113_s7 + $0x1f8] sm:$0xff] }
  0xcf   : > { %689 = vmatmul.mubr.f32.gmra.mxu1 %v326_v29  ;;  %v358_v29 = vld [vmem:[%s2113_s7 + $0x3e0] sm:$0xff] }
  0xd0   : > { %693 = vmatprep.mubr.f32.mxu1 %v329_v30  ;;  %v361_v30 = vld [vmem:[%s2113_s7 + $0x3f8] sm:$0xff] }
  0xd1   : > { %534 = vmatmul.mubr.f32.gmra.mxu0 %v264_v31  ;;  %v296_v31 = vld [vmem:[%s2113_s7 + $0x1f0] sm:$0xff] }
  0xd2   : > { %538 = vmatprep.mubr.f32.mxu0 %v267_v32  ;;  %v360_v32 = vld [vmem:[%s2113_s7 + $0x3f0] sm:$0xff] }
  0xd3   : > { %694 = vmatmul.mubr.f32.gmra.mxu1 %v328_v33 }
  0xd4   : > { %698 = vmatprep.mubr.f32.mxu1 %v331_v34 }
  0xd5   : > { %539 = vmatmul.mubr.f32.gmra.mxu0 %v266_v35 }
  0xd6   : > { %543 = vmatprep.mubr.f32.mxu0 %v269_v36 }
  0xd7   : > { %699 = vmatmul.mubr.f32.gmra.mxu1 %v330_v37 }
  0xd8   : > { %703 = vmatprep.mubr.f32.mxu1 %v333_v38 }
  0xd9   : > { %544 = vmatmul.mubr.f32.gmra.mxu0 %v268_v39 }
  0xda   : > { %548 = vmatprep.mubr.f32.mxu0 %v271_v40 }
  0xdb   : > { %704 = vmatmul.mubr.f32.gmra.mxu1 %v332_v41 }
  0xdc   : > { %708 = vmatprep.mubr.f32.mxu1 %v335_v42 }
  0xdd   : > { %549 = vmatmul.mubr.f32.gmra.mxu0 %v270_v43 }
  0xde   : > { %553 = vmatprep.mubr.f32.mxu0 %v273_v44 }
  0xdf   : > { %709 = vmatmul.mubr.f32.gmra.mxu1 %v334_v45 }
  0xe0   : > { %713 = vmatprep.mubr.f32.mxu1 %v337_v46 }
  0xe1   : > { %554 = vmatmul.mubr.f32.gmra.mxu0 %v272_v47 }
  0xe2   : > { %558 = vmatprep.mubr.f32.mxu0 %v275_v48 }
  0xe3   : > { %714 = vmatmul.mubr.f32.gmra.mxu1 %v336_v49 }
  0xe4   : > { %718 = vmatprep.mubr.f32.mxu1 %v339_v50 }
  0xe5   : > { %559 = vmatmul.mubr.f32.gmra.mxu0 %v274_v51 }
  0xe6   : > { %563 = vmatprep.mubr.f32.mxu0 %v277_v52 }
  0xe7   : > { %719 = vmatmul.mubr.f32.gmra.mxu1 %v338_v53 }
  0xe8   : > { %723 = vmatprep.mubr.f32.mxu1 %v341_v54 }
  0xe9   : > { %564 = vmatmul.mubr.f32.gmra.mxu0 %v276_v55 }
  0xea   : > { %568 = vmatprep.mubr.f32.mxu0 %v279_v56 }
  0xeb   : > { %724 = vmatmul.mubr.f32.gmra.mxu1 %v340_v57 }
  0xec   : > { %728 = vmatprep.mubr.f32.mxu1 %v343_v58 }
  0xed   : > { %569 = vmatmul.mubr.f32.gmra.mxu0 %v278_v59 }
  0xee   : > { %573 = vmatprep.mubr.f32.mxu0 %v281_v60 }
  0xef   : > { %729 = vmatmul.mubr.f32.gmra.mxu1 %v342_v61 }
  0xf0   : > { %733 = vmatprep.mubr.f32.mxu1 %v345_v62  ;;  %v1099_v62 = vlaneseq }
  0xf1   : > { %574 = vmatmul.mubr.f32.gmra.mxu0 %v280_v63 }
  0xf2   : > { %578 = vmatprep.mubr.f32.mxu0 %v283_v0 }
  0xf3   : > { %734 = vmatmul.mubr.f32.gmra.mxu1 %v344_v1 }
  0xf4   : > { %738 = vmatprep.mubr.f32.mxu1 %v347_v2 }
  0xf5   : > { %579 = vmatmul.mubr.f32.gmra.mxu0 %v282_v3 }
  0xf6   : > { %583 = vmatprep.mubr.f32.mxu0 %v285_v4 }
  0xf7   : > { %739 = vmatmul.mubr.f32.gmra.mxu1 %v346_v5 }
  0xf8   : > { %743 = vmatprep.mubr.f32.mxu1 %v349_v6 }
  0xf9   : > { %584 = vmatmul.mubr.f32.gmra.mxu0 %v284_v7 }
  0xfa   : > { %588 = vmatprep.mubr.f32.mxu0 %v287_v8 }
  0xfb   : > { %744 = vmatmul.mubr.f32.gmra.mxu1 %v348_v9 }
  0xfc   : > { %748 = vmatprep.mubr.f32.mxu1 %v351_v10 }
  0xfd   : > { %589 = vmatmul.mubr.f32.gmra.mxu0 %v286_v11 }
  0xfe   : > { %593 = vmatprep.mubr.f32.mxu0 %v289_v12 }
  0xff   : > { %749 = vmatmul.mubr.f32.gmra.mxu1 %v350_v13  ;;  %v2325_v13 = vshrl.u32 %v1099_v62, 7 }
 0x100   : > { %753 = vmatprep.mubr.f32.mxu1 %v353_v14 }
 0x101   : > { %594 = vmatmul.mubr.f32.gmra.mxu0 %v288_v15 }
 0x102   : > { %598 = vmatprep.mubr.f32.mxu0 %v291_v16 }
 0x103   : > { %754 = vmatmul.mubr.f32.gmra.mxu1 %v352_v17 }
 0x104   : > { %758 = vmatprep.mubr.f32.mxu1 %v355_v18 }
 0x105   : > { %599 = vmatmul.mubr.f32.gmra.mxu0 %v290_v19 }
 0x106   : > { %603 = vmatprep.mubr.f32.mxu0 %v293_v20  ;;  %v2331_v20 = vstv %s1165_s19 }
 0x107   : > { %759 = vmatmul.mubr.f32.gmra.mxu1 %v354_v21  ;;  %vm1167_vm0 = vcmp.lt.s32.totalorder %v2325_v13, %v2331_v20 }
 0x108   : > { %763 = vmatprep.mubr.f32.mxu1 %v357_v22  ;;  %v1102_v22 = vadd.s32 16, %v2325_v13 }
 0x109   : > { %604 = vmatmul.mubr.f32.gmra.mxu0 %v292_v23 }
 0x10a   : > { %608 = vmatprep.mubr.f32.mxu0 %v295_v24  ;;  %vm1169_vm1 = vcmp.lt.s32.totalorder %v1102_v22, %v2331_v20 }
 0x10b   : > { %764 = vmatmul.mubr.f32.gmra.mxu1 %v356_v25  ;;  %v2339_v25 = vadd.s32 8, %v2325_v13 }
 0x10c   : > { %768 = vmatprep.mubr.f32.mxu1 %v359_v26  ;;  %v1103_v26 = vadd.s32 24, %v2325_v13 }
 0x10d   : > { %609 = vmatmul.mubr.f32.gmra.mxu0 %v294_v27  ;;  %vm1168_vm2 = vcmp.lt.s32.totalorder %v2339_v25, %v2331_v20 }
 0x10e   : > { %613 = vmatprep.mubr.f32.mxu0 %v297_v28  ;;  %vm1170_vm3 = vcmp.lt.s32.totalorder %v1103_v26, %v2331_v20  ;;  %v1107_v26 = vadd.s32 56, %v2325_v13 }
 0x10f   : > { %769 = vmatmul.mubr.f32.gmra.mxu1 %v358_v29 }
 0x110   : > { %773 = vmatprep.mubr.f32.mxu1 %v361_v30  ;;  %vm1174_vm12 = vcmp.lt.s32.totalorder %v1107_v26, %v2331_v20 }
 0x111   : > { %614 = vmatmul.mubr.f32.gmra.mxu0 %v296_v31  ;;  %v1132_v31 = vadd.s32 256, %v2325_v13 }
 0x113   : > { %774 = vmatmul.mubr.f32.gmra.mxu1 %v360_v32  ;;  %vm1199_vm4 = vcmp.lt.s32.totalorder %v1132_v31, %v2331_v20 }
 0x155   : > { %v460_v33 = vpop.f32.mrf.mxu0 }
 0x156   : > { %v779_v34 = vmax.f32 %v460_v33, 1e-10 }
 0x157   : > { %v462_v35 = vpop.f32.mrf.mxu0  ;;  %v620_v36 = vpop.f32.mrf.mxu1 }
 0x158   : > { %1678 = vlog2.f32 %v779_v34  ;;  %v811_v37 = vmax.f32 %v620_v36, 1e-10  ;;  %v2346_v34 = vadd.s32 264, %v2325_v13 }
 0x159   : > { %v465_v38 = vpop.f32.mrf.mxu0  ;;  %v622_v39 = vpop.f32.mrf.mxu1 }
 0x15a   : > { %v780_v40 = vmax.f32 %v465_v38, 1e-10  ;;  %1680 = vlog2.f32 %v811_v37  ;;  %vm1200_vm5 = vcmp.lt.s32.totalorder %v2346_v34, %v2331_v20 }
 0x15b   : > { %v467_v41 = vpop.f32.mrf.mxu0  ;;  %v625_v42 = vpop.f32.mrf.mxu1 }
 0x15c   : > { %1682 = vlog2.f32 %v780_v40  ;;  %v812_v43 = vmax.f32 %v625_v42, 1e-10  ;;  %v1104_v41 = vadd.s32 32, %v2325_v13 }
 0x15d   : > { %v470_v44 = vpop.f32.mrf.mxu0  ;;  %v627_v45 = vpop.f32.mrf.mxu1 }
 0x15e   : > { %v781_v46 = vmax.f32 %v470_v44, 1e-10  ;;  %1684 = vlog2.f32 %v812_v43  ;;  %vm1171_vm6 = vcmp.lt.s32.totalorder %v1104_v41, %v2331_v20 }
 0x15f   : > { %v472_v47 = vpop.f32.mrf.mxu0  ;;  %v630_v48 = vpop.f32.mrf.mxu1 }
 0x160   : > { %1686 = vlog2.f32 %v781_v46  ;;  %v813_v49 = vmax.f32 %v630_v48, 1e-10  ;;  %v2362_v46 = vadd.s32 272, %v2325_v13 }
 0x161   : > { %v475_v50 = vpop.f32.mrf.mxu0  ;;  %v632_v51 = vpop.f32.mrf.mxu1 }
 0x162   : > { %v782_v52 = vmax.f32 %v475_v50, 1e-10  ;;  %1688 = vlog2.f32 %v813_v49  ;;  %v1105_v49 = vadd.s32 40, %v2325_v13  ;;  %vm1201_vm7 = vcmp.lt.s32.totalorder %v2362_v46, %v2331_v20 }
 0x163   : > { %v477_v53 = vpop.f32.mrf.mxu0  ;;  %v635_v54 = vpop.f32.mrf.mxu1 }
 0x164   : > { %1690 = vlog2.f32 %v782_v52  ;;  %v814_v55 = vmax.f32 %v635_v54, 1e-10  ;;  %vm1172_vm8 = vcmp.lt.s32.totalorder %v1105_v49, %v2331_v20 }
 0x165   : > { %v1679_v56 = vpop.eup %1678  ;;  %v480_v57 = vpop.f32.mrf.mxu0 }
 0x166   : > { %v637_v58 = vpop.f32.mrf.mxu1  ;;  %v844_v59 = vmul.f32 0.6931472, %v1679_v56  ;;  %v783_v60 = vmax.f32 %v480_v57, 1e-10  ;;  %1692 = vlog2.f32 %v814_v55 }
 0x167   : > { %v1681_v61 = vpop.eup %1680  ;;  %v482_v63 = vpop.f32.mrf.mxu0 }
 0x168   : > { %v640_v0 = vpop.f32.mrf.mxu1  ;;  %v2317_v1 = vmul.f32 4.3429446, %v844_v59  ;;  %v908_v2 = vmul.f32 0.6931472, %v1681_v61  ;;  %1694 = vlog2.f32 %v783_v60  ;;  %v2380_v63 = vadd.s32 280, %v2325_v13 }
 0x169   : > { %v815_v3 = vmax.f32 %v640_v0, 1e-10  ;;  %v1683_v4 = vpop.eup %1682  ;;  %v485_v5 = vpop.f32.mrf.mxu0 }
 0x16a   : > { %v642_v6 = vpop.f32.mrf.mxu1  ;;  %1035 = vst [vmem:[%s2319_s11] sm:$0xff] %v2317_v1  ;;  %v846_v7 = vmul.f32 0.6931472, %v1683_v4  ;;  %v2323_v8 = vmul.f32 4.3429446, %v908_v2  ;;  %v784_v10 = vmax.f32 %v485_v5, 1e-10  ;;  %vm1202_vm9 = vcmp.lt.s32.totalorder %v2380_v63, %v2331_v20 }
 0x16b   : > { %1696 = vlog2.f32 %v815_v3  ;;  %v1685_v9 = vpop.eup %1684  ;;  %v487_v11 = vpop.f32.mrf.mxu0  ;;  %v1231_v2 = vsel %vm1167_vm0, %v2317_v1, -inf }
 0x16c   : > { %v645_v12 = vpop.f32.mrf.mxu1  ;;  %v2327_v14 = vmul.f32 4.3429446, %v846_v7  ;;  %1067 = vst [vmem:[%s2319_s11 + $0x100] sm:$0xff] %v2323_v8  ;;  %v910_v15 = vmul.f32 0.6931472, %v1685_v9  ;;  %1698 = vlog2.f32 %v784_v10  ;;  %v1263_v7 = vsel %vm1199_vm4, %v2323_v8, -inf }
 0x16d   : > { %v1687_v16 = vpop.eup %1686  ;;  %v490_v17 = vpop.f32.mrf.mxu0  ;;  %v816_v18 = vmax.f32 %v645_v12, 1e-10  ;;  %v2401_v8 = vadd.s32 288, %v2325_v13 }
 0x16e   : > { %v647_v19 = vpop.f32.mrf.mxu1  ;;  %1036 = vst [vmem:[%s2319_s11 + $0x8] sm:$0xff] %v2327_v14  ;;  %v848_v21 = vmul.f32 0.6931472, %v1687_v16  ;;  %v2336_v23 = vmul.f32 4.3429446, %v910_v15  ;;  %v1232_v31 = vsel %vm1168_vm2, %v2327_v14, -inf }
 0x16f   : > { %v1689_v24 = vpop.eup %1688  ;;  %v785_v27 = vmax.f32 %v490_v17, 1e-10  ;;  %v492_v28 = vpop.f32.mrf.mxu0  ;;  %1700 = vlog2.f32 %v816_v18  ;;  %v1106_v19 = vadd.s32 48, %v2325_v13  ;;  %vm1203_vm11 = vcmp.lt.s32.totalorder %v2401_v8, %v2331_v20 }
 0x170   : > { %v650_v29 = vpop.f32.mrf.mxu1  ;;  %v973_v30 = vmul.f32 4.3429446, %v848_v21  ;;  %1068 = vst [vmem:[%s2319_s11 + $0x108] sm:$0xff] %v2336_v23  ;;  %v912_v32 = vmul.f32 0.6931472, %v1689_v24 }
 0x171   : > { %v1691_v33 = vpop.eup %1690  ;;  %1702 = vlog2.f32 %v785_v27  ;;  %v495_v35 = vpop.f32.mrf.mxu0  ;;  %v817_v36 = vmax.f32 %v650_v29, 1e-10  ;;  %vm1173_vm10 = vcmp.lt.s32.totalorder %v1106_v19, %v2331_v20 }
 0x172   : > { %v652_v37 = vpop.f32.mrf.mxu1  ;;  %1037 = vst [vmem:[%s2319_s11 + $0x10] sm:$0xff] %v973_v30  ;;  %v850_v38 = vmul.f32 0.6931472, %v1691_v33  ;;  %v2352_v39 = vmul.f32 4.3429446, %v912_v32  ;;  %v1233_v53 = vsel %vm1169_vm1, %v973_v30, -inf }
 0x173   : > { %v1693_v40 = vpop.eup %1692  ;;  %v786_v42 = vmax.f32 %v495_v35, 1e-10  ;;  %v497_v43 = vpop.f32.mrf.mxu0  ;;  %1704 = vlog2.f32 %v817_v36  ;;  %v1264_v32 = vsel %vm1200_vm5, %v2336_v23, -inf }
 0x174   : > { %v655_v44 = vpop.f32.mrf.mxu1  ;;  %v974_v45 = vmul.f32 4.3429446, %v850_v38  ;;  %1069 = vst [vmem:[%s2319_s11 + $0x110] sm:$0xff] %v2352_v39  ;;  %v914_v47 = vmul.f32 0.6931472, %v1693_v40 }
 0x175   : > { %v1695_v48 = vpop.eup %1694  ;;  %1706 = vlog2.f32 %v786_v42  ;;  %v500_v50 = vpop.f32.mrf.mxu0  ;;  %v818_v51 = vmax.f32 %v655_v44, 1e-10  ;;  %v2423_v42 = vadd.s32 296, %v2325_v13 }
 0x176   : > { %v657_v52 = vpop.f32.mrf.mxu1  ;;  %1038 = vst [vmem:[%s2319_s11 + $0x18] sm:$0xff] %v974_v45  ;;  %v1234_v54 = vsel %vm1170_vm3, %v974_v45, -inf  ;;  %v852_v55 = vmul.f32 0.6931472, %v1695_v48  ;;  %v2372_v56 = vmul.f32 4.3429446, %v914_v47 }
 0x177   : > { %v1297_v58 = vmax.f32 %v1233_v53, %v1234_v54  ;;  %v787_v59 = vmax.f32 %v500_v50, 1e-10  ;;  %v502_v60 = vpop.f32.mrf.mxu0  ;;  %1708 = vlog2.f32 %v818_v51  ;;  %v1265_v50 = vsel %vm1201_vm7, %v2352_v39, -inf }
 0x178   : > { %v1697_v57 = vpop.eup %1696  ;;  %v660_v61 = vpop.f32.mrf.mxu1  ;;  %v975_v62 = vmul.f32 4.3429446, %v852_v55  ;;  %1070 = vst [vmem:[%s2319_s11 + $0x118] sm:$0xff] %v2372_v56  ;;  %vm1204_vm13 = vcmp.lt.s32.totalorder %v2423_v42, %v2331_v20  ;;  %v1109_v39 = vadd.s32 72, %v2325_v13 }
 0x179   : > { %v916_v0 = vmul.f32 0.6931472, %v1697_v57  ;;  %1710 = vlog2.f32 %v787_v59  ;;  %v505_v3 = vpop.f32.mrf.mxu0  ;;  %v819_v4 = vmax.f32 %v660_v61, 1e-10  ;;  %v1699_v6 = vpop.eup %1698  ;;  %v1298_v1 = vmax.f32 %v1263_v7, %v1297_v58 }
 0x17a   : > { %v662_v5 = vpop.f32.mrf.mxu1  ;;  %1039 = vst [vmem:[%s2319_s11 + $0x20] sm:$0xff] %v975_v62  ;;  %v1235_v9 = vsel %vm1171_vm6, %v975_v62, -inf  ;;  %v788_v11 = vmax.f32 %v505_v3, 1e-10  ;;  %v854_v15 = vmul.f32 0.6931472, %v1699_v6  ;;  %vm1176_vm15 = vcmp.lt.s32.totalorder %v1109_v39, %v2331_v20 }
 0x17b   : > { %v2393_v10 = vmul.f32 4.3429446, %v916_v0  ;;  %v1295_v12 = vmax.f32 %v1231_v2, %v1235_v9  ;;  %v507_v16 = vpop.f32.mrf.mxu0  ;;  %1712 = vlog2.f32 %v819_v4  ;;  %v1108_v59 = vadd.s32 64, %v2325_v13 }
 0x17c   : > { %v665_v17 = vpop.f32.mrf.mxu1  ;;  %v1701_v18 = vpop.eup %1700  ;;  %1714 = vlog2.f32 %v788_v11  ;;  %v976_v24 = vmul.f32 4.3429446, %v854_v15  ;;  %v2442_v4 = vadd.s32 304, %v2325_v13  ;;  %v1266_v6 = vsel %vm1202_vm9, %v2372_v56, -inf }
 0x17d   : > { %1071 = vst [vmem:[%s2319_s11 + $0x120] sm:$0xff] %v2393_v10  ;;  %v820_v21 = vmax.f32 %v665_v17, 1e-10  ;;  %v1299_v22 = vmax.f32 %v1295_v12, %v1298_v1  ;;  %v918_v27 = vmul.f32 0.6931472, %v1701_v18  ;;  %v510_v28 = vpop.f32.mrf.mxu0  ;;  %vm1175_vm14 = vcmp.lt.s32.totalorder %v1108_v59, %v2331_v20 }
 0x17e   : > { %v667_v29 = vpop.f32.mrf.mxu1  ;;  %v1703_v30 = vpop.eup %1702  ;;  %v789_v33 = vmax.f32 %v510_v28, 1e-10  ;;  %1040 = vst [vmem:[%s2319_s11 + $0x28] sm:$0xff] %v976_v24  ;;  %v1236_v36 = vsel %vm1172_vm8, %v976_v24, -inf  ;;  %v2458_v56 = vadd.s32 312, %v2325_v13  ;;  %vm1205_vm0 = vcmp.lt.s32.totalorder %v2442_v4, %v2331_v20 }
 0x17f   : > { %1716 = vlog2.f32 %v820_v21  ;;  %v1300_v35 = vmax.f32 %v1264_v32, %v1299_v22  ;;  %v856_v37 = vmul.f32 0.6931472, %v1703_v30  ;;  %v2415_v38 = vmul.f32 4.3429446, %v918_v27  ;;  %v512_v40 = vpop.f32.mrf.mxu0 }
 0x180   : > { %v670_v41 = vpop.f32.mrf.mxu1  ;;  %v1705_v25 = vpop.eup %1704  ;;  %v1296_v14 = vmax.f32 %v1232_v31, %v1236_v36  ;;  %1718 = vlog2.f32 %v789_v33  ;;  %v1267_v29 = vsel %vm1203_vm11, %v2393_v10, -inf  ;;  %v1110_v31 = vadd.s32 80, %v2325_v13 }
 0x181   : > { %v821_v23 = vmax.f32 %v670_v41, 1e-10  ;;  %v977_v34 = vmul.f32 4.3429446, %v856_v37  ;;  %1072 = vst [vmem:[%s2319_s11 + $0x128] sm:$0xff] %v2415_v38  ;;  %v515_v44 = vpop.f32.mrf.mxu0  ;;  %vm1206_vm1 = vcmp.lt.s32.totalorder %v2458_v56, %v2331_v20  ;;  %v2477_v10 = vadd.s32 320, %v2325_v13 }
 0x182   : > { %v920_v43 = vmul.f32 0.6931472, %v1705_v25  ;;  %v672_v45 = vpop.f32.mrf.mxu1  ;;  %v1707_v47 = vpop.eup %1706  ;;  %v1301_v48 = vmax.f32 %v1296_v14, %v1300_v35  ;;  %v790_v49 = vmax.f32 %v515_v44, 1e-10  ;;  %vm1177_vm2 = vcmp.lt.s32.totalorder %v1110_v31, %v2331_v20 }
 0x183   : > { %1720 = vlog2.f32 %v821_v23  ;;  %1041 = vst [vmem:[%s2319_s11 + $0x30] sm:$0xff] %v977_v34  ;;  %v1237_v51 = vsel %vm1173_vm10, %v977_v34, -inf  ;;  %v858_v52 = vmul.f32 0.6931472, %v1707_v47  ;;  %v517_v54 = vpop.f32.mrf.mxu0  ;;  %v1268_v47 = vsel %vm1204_vm13, %v2415_v38, -inf }
 0x184   : > { %v2433_v53 = vmul.f32 4.3429446, %v920_v43  ;;  %v675_v55 = vpop.f32.mrf.mxu1  ;;  %v1709_v57 = vpop.eup %1708  ;;  %v1302_v58 = vmax.f32 %v1265_v50, %v1301_v48  ;;  %1722 = vlog2.f32 %v790_v49  ;;  %v1111_v43 = vadd.s32 88, %v2325_v13 }
 0x185   : > { %v822_v60 = vmax.f32 %v675_v55, 1e-10  ;;  %v978_v61 = vmul.f32 4.3429446, %v858_v52  ;;  %v922_v46 = vmul.f32 0.6931472, %v1709_v57  ;;  %v520_v62 = vpop.f32.mrf.mxu0  ;;  %vm1207_vm3 = vcmp.lt.s32.totalorder %v2477_v10, %v2331_v20 }
 0x186   : > { %1073 = vst [vmem:[%s2319_s11 + $0x130] sm:$0xff] %v2433_v53  ;;  %v677_v0 = vpop.f32.mrf.mxu1  ;;  %v1711_v2 = vpop.eup %1710  ;;  %v1303_v3 = vmax.f32 %v1237_v51, %v1302_v58  ;;  %v791_v5 = vmax.f32 %v520_v62, 1e-10  ;;  %v2495_v38 = vadd.s32 328, %v2325_v13  ;;  %vm1178_vm4 = vcmp.lt.s32.totalorder %v1111_v43, %v2331_v20 }
 0x187   : > { %1724 = vlog2.f32 %v822_v60  ;;  %1042 = vst [vmem:[%s2319_s11 + $0x38] sm:$0xff] %v978_v61  ;;  %v1238_v7 = vsel %vm1174_vm12, %v978_v61, -inf  ;;  %v860_v9 = vmul.f32 0.6931472, %v1711_v2  ;;  %v2451_v11 = vmul.f32 4.3429446, %v922_v46  ;;  %v522_v1 = vpop.f32.mrf.mxu0 }
 0x188   : > { %v680_v12 = vpop.f32.mrf.mxu1  ;;  %v1713_v15 = vpop.eup %1712  ;;  %v1304_v16 = vmax.f32 %v1266_v6, %v1303_v3  ;;  %1726 = vlog2.f32 %v791_v5  ;;  %v1269_v62 = vsel %vm1205_vm0, %v2433_v53, -inf  ;;  %vm1208_vm5 = vcmp.lt.s32.totalorder %v2495_v38, %v2331_v20 }
 0x189   : > { %v823_v17 = vmax.f32 %v680_v12, 1e-10  ;;  %v1715_v18 = vpop.eup %1714  ;;  %v979_v63 = vmul.f32 4.3429446, %v860_v9  ;;  %1074 = vst [vmem:[%s2319_s11 + $0x138] sm:$0xff] %v2451_v11  ;;  %v525_v21 = vpop.f32.mrf.mxu0  ;;  %v1112_v9 = vadd.s32 96, %v2325_v13 }
 0x18a   : > { %v924_v19 = vmul.f32 0.6931472, %v1713_v15  ;;  %v682_v22 = vpop.f32.mrf.mxu1  ;;  %v1305_v24 = vmax.f32 %v1238_v7, %v1304_v16  ;;  %v862_v26 = vmul.f32 0.6931472, %v1715_v18  ;;  %v792_v27 = vmax.f32 %v525_v21, 1e-10 }
 0x18b   : > { %1728 = vlog2.f32 %v823_v17  ;;  %1043 = vst [vmem:[%s2319_s11 + $0x40] sm:$0xff] %v979_v63  ;;  %v1239_v30 = vsel %vm1175_vm14, %v979_v63, -inf  ;;  %v527_v33 = vpop.f32.mrf.mxu0  ;;  %v2513_v53 = vadd.s32 336, %v2325_v13  ;;  %v1113_v63 = vadd.s32 104, %v2325_v13 }
 0x18c   : > { %v1717_v28 = vpop.eup %1716  ;;  %v2468_v32 = vmul.f32 4.3429446, %v924_v19  ;;  %v685_v35 = vpop.f32.mrf.mxu1  ;;  %v1306_v36 = vmax.f32 %v1267_v29, %v1305_v24  ;;  %v980_v37 = vmul.f32 4.3429446, %v862_v26  ;;  %1730 = vlog2.f32 %v792_v27 }
 0x18d   : > { %v926_v40 = vmul.f32 0.6931472, %v1717_v28  ;;  %v1719_v41 = vpop.eup %1718  ;;  %v530_v8 = vpop.f32.mrf.mxu0  ;;  %v824_v25 = vmax.f32 %v685_v35, 1e-10  ;;  %v1270_v22 = vsel %vm1206_vm1, %v2451_v11, -inf  ;;  %vm1179_vm6 = vcmp.lt.s32.totalorder %v1112_v9, %v2331_v20 }
 0x18e   : > { %1075 = vst [vmem:[%s2319_s11 + $0x140] sm:$0xff] %v2468_v32  ;;  %v687_v14 = vpop.f32.mrf.mxu1  ;;  %v1307_v23 = vmax.f32 %v1239_v30, %v1306_v36  ;;  %1044 = vst [vmem:[%s2319_s11 + $0x48] sm:$0xff] %v980_v37  ;;  %v864_v34 = vmul.f32 0.6931472, %v1719_v41  ;;  %v1240_v48 = vsel %vm1176_vm15, %v980_v37, -inf  ;;  %vm1209_vm7 = vcmp.lt.s32.totalorder %v2513_v53, %v2331_v20 }
 0x18f   : > { %v2481_v44 = vmul.f32 4.3429446, %v926_v40  ;;  %v793_v49 = vmax.f32 %v530_v8, 1e-10  ;;  %v532_v50 = vpop.f32.mrf.mxu0  ;;  %1732 = vlog2.f32 %v824_v25  ;;  %v2531_v11 = vadd.s32 344, %v2325_v13 }
 0x190   : > { %v1721_v45 = vpop.eup %1720  ;;  %v690_v51 = vpop.f32.mrf.mxu1  ;;  %v1308_v52 = vmax.f32 %v1268_v47, %v1307_v23  ;;  %v981_v54 = vmul.f32 4.3429446, %v864_v34  ;;  %vm1180_vm8 = vcmp.lt.s32.totalorder %v1113_v63, %v2331_v20  ;;  %v1271_v8 = vsel %vm1207_vm3, %v2468_v32, -inf }
 0x191   : > { %1076 = vst [vmem:[%s2319_s11 + $0x148] sm:$0xff] %v2481_v44  ;;  %v928_v55 = vmul.f32 0.6931472, %v1721_v45  ;;  %v1723_v57 = vpop.eup %1722  ;;  %1734 = vlog2.f32 %v793_v49  ;;  %v535_v42 = vpop.f32.mrf.mxu0  ;;  %v825_v58 = vmax.f32 %v690_v51, 1e-10  ;;  %vm1210_vm9 = vcmp.lt.s32.totalorder %v2531_v11, %v2331_v20 }
 0x192   : > { %v692_v59 = vpop.f32.mrf.mxu1  ;;  %v1309_v60 = vmax.f32 %v1240_v48, %v1308_v52  ;;  %1045 = vst [vmem:[%s2319_s11 + $0x50] sm:$0xff] %v981_v54  ;;  %v866_v61 = vmul.f32 0.6931472, %v1723_v57  ;;  %v1241_v0 = vsel %vm1177_vm2, %v981_v54, -inf  ;;  %v794_v2 = vmax.f32 %v535_v42, 1e-10 }
 0x193   : > { %v2499_v39 = vmul.f32 4.3429446, %v928_v55  ;;  %v537_v3 = vpop.f32.mrf.mxu0  ;;  %1736 = vlog2.f32 %v825_v58  ;;  %v1114_v48 = vadd.s32 112, %v2325_v13  ;;  %v2549_v32 = vadd.s32 352, %v2325_v13 }
 0x194   : > { %v1725_v46 = vpop.eup %1724  ;;  %v695_v5 = vpop.f32.mrf.mxu1  ;;  %v1310_v6 = vmax.f32 %v1269_v62, %v1309_v60  ;;  %v982_v7 = vmul.f32 4.3429446, %v866_v61  ;;  %1738 = vlog2.f32 %v794_v2  ;;  %v1115_v55 = vadd.s32 120, %v2325_v13 }
 0x195   : > { %1077 = vst [vmem:[%s2319_s11 + $0x150] sm:$0xff] %v2499_v39  ;;  %v930_v1 = vmul.f32 0.6931472, %v1725_v46  ;;  %v1727_v12 = vpop.eup %1726  ;;  %v540_v4 = vpop.f32.mrf.mxu0  ;;  %v826_v15 = vmax.f32 %v695_v5, 1e-10  ;;  %v1272_v42 = vsel %vm1208_vm5, %v2481_v44, -inf  ;;  %vm1181_vm10 = vcmp.lt.s32.totalorder %v1114_v48, %v2331_v20 }
 0x196   : > { %v697_v16 = vpop.f32.mrf.mxu1  ;;  %v1311_v17 = vmax.f32 %v1241_v0, %v1310_v6  ;;  %1046 = vst [vmem:[%s2319_s11 + $0x58] sm:$0xff] %v982_v7  ;;  %v868_v18 = vmul.f32 0.6931472, %v1727_v12  ;;  %v1242_v24 = vsel %vm1178_vm4, %v982_v7, -inf  ;;  %v795_v26 = vmax.f32 %v540_v4, 1e-10 }
 0x197   : > { %v2517_v19 = vmul.f32 4.3429446, %v930_v1  ;;  %v542_v27 = vpop.f32.mrf.mxu0  ;;  %1740 = vlog2.f32 %v826_v15  ;;  %vm1211_vm11 = vcmp.lt.s32.totalorder %v2549_v32, %v2331_v20  ;;  %v2567_v44 = vadd.s32 360, %v2325_v13 }
 0x198   : > { %v1729_v21 = vpop.eup %1728  ;;  %v700_v28 = vpop.f32.mrf.mxu1  ;;  %v1312_v29 = vmax.f32 %v1270_v22, %v1311_v17  ;;  %v983_v30 = vmul.f32 4.3429446, %v868_v18  ;;  %1742 = vlog2.f32 %v795_v26  ;;  %vm1182_vm12 = vcmp.lt.s32.totalorder %v1115_v55, %v2331_v20 }
 0x199   : > { %1078 = vst [vmem:[%s2319_s11 + $0x158] sm:$0xff] %v2517_v19  ;;  %v932_v31 = vmul.f32 0.6931472, %v1729_v21  ;;  %v1731_v33 = vpop.eup %1730  ;;  %v545_v56 = vpop.f32.mrf.mxu0  ;;  %v827_v35 = vmax.f32 %v700_v28, 1e-10  ;;  %v1273_v12 = vsel %vm1209_vm7, %v2499_v39, -inf  ;;  %vm1212_vm13 = vcmp.lt.s32.totalorder %v2567_v44, %v2331_v20 }
 0x19a   : > { %v702_v36 = vpop.f32.mrf.mxu1  ;;  %v1313_v37 = vmax.f32 %v1242_v24, %v1312_v29  ;;  %1047 = vst [vmem:[%s2319_s11 + $0x60] sm:$0xff] %v983_v30  ;;  %v870_v40 = vmul.f32 0.6931472, %v1731_v33  ;;  %v1243_v25 = vsel %vm1179_vm6, %v983_v30, -inf  ;;  %v796_v14 = vmax.f32 %v545_v56, 1e-10 }
 0x19b   : > { %v2535_v41 = vmul.f32 4.3429446, %v932_v31  ;;  %v547_v23 = vpop.f32.mrf.mxu0  ;;  %1744 = vlog2.f32 %v827_v35  ;;  %v1116_v22 = vadd.s32 128, %v2325_v13  ;;  %v1117_v39 = vadd.s32 136, %v2325_v13 }
 0x19c   : > { %v705_v34 = vpop.f32.mrf.mxu1  ;;  %v1733_v43 = vpop.eup %1732  ;;  %v1314_v45 = vmax.f32 %v1271_v8, %v1313_v37  ;;  %v984_v47 = vmul.f32 4.3429446, %v870_v40  ;;  %1746 = vlog2.f32 %v796_v14  ;;  %v2586_v31 = vadd.s32 368, %v2325_v13 }
 0x19d   : > { %1079 = vst [vmem:[%s2319_s11 + $0x160] sm:$0xff] %v2535_v41  ;;  %v828_v49 = vmax.f32 %v705_v34, 1e-10  ;;  %v934_v10 = vmul.f32 0.6931472, %v1733_v43  ;;  %v550_v50 = vpop.f32.mrf.mxu0  ;;  %v1274_v56 = vsel %vm1210_vm9, %v2517_v19, -inf  ;;  %vm1183_vm14 = vcmp.lt.s32.totalorder %v1116_v22, %v2331_v20 }
 0x19e   : > { %v707_v51 = vpop.f32.mrf.mxu1  ;;  %v1735_v52 = vpop.eup %1734  ;;  %v1315_v54 = vmax.f32 %v1243_v25, %v1314_v45  ;;  %1048 = vst [vmem:[%s2319_s11 + $0x68] sm:$0xff] %v984_v47  ;;  %v797_v57 = vmax.f32 %v550_v50, 1e-10  ;;  %v1244_v58 = vsel %vm1180_vm8, %v984_v47, -inf  ;;  %vm1184_vm15 = vcmp.lt.s32.totalorder %v1117_v39, %v2331_v20 }
 0x19f   : > { %1748 = vlog2.f32 %v828_v49  ;;  %v872_v59 = vmul.f32 0.6931472, %v1735_v52  ;;  %v2559_v60 = vmul.f32 4.3429446, %v934_v10  ;;  %v552_v61 = vpop.f32.mrf.mxu0  ;;  %v2602_v19 = vadd.s32 376, %v2325_v13 }
 0x1a0   : > { %v710_v46 = vpop.f32.mrf.mxu1  ;;  %v1737_v62 = vpop.eup %1736  ;;  %v1316_v0 = vmax.f32 %v1272_v42, %v1315_v54  ;;  %1750 = vlog2.f32 %v797_v57  ;;  %v1118_v49 = vadd.s32 144, %v2325_v13  ;;  %v1275_v51 = vsel %vm1211_vm11, %v2535_v41, -inf }
 0x1a1   : > { %v829_v2 = vmax.f32 %v710_v46, 1e-10  ;;  %v985_v3 = vmul.f32 4.3429446, %v872_v59  ;;  %1080 = vst [vmem:[%s2319_s11 + $0x168] sm:$0xff] %v2559_v60  ;;  %v555_v5 = vpop.f32.mrf.mxu0  ;;  %v1739_v7 = vpop.eup %1738  ;;  %vm1213_vm0 = vcmp.lt.s32.totalorder %v2586_v31, %v2331_v20  ;;  %v1119_v41 = vadd.s32 152, %v2325_v13 }
 0x1a2   : > { %v936_v38 = vmul.f32 0.6931472, %v1737_v62  ;;  %v712_v6 = vpop.f32.mrf.mxu1  ;;  %v1317_v9 = vmax.f32 %v1244_v58, %v1316_v0  ;;  %v798_v1 = vmax.f32 %v555_v5, 1e-10  ;;  %v874_v15 = vmul.f32 0.6931472, %v1739_v7 }
 0x1a3   : > { %1752 = vlog2.f32 %v829_v2  ;;  %1049 = vst [vmem:[%s2319_s11 + $0x70] sm:$0xff] %v985_v3  ;;  %v1245_v4 = vsel %vm1181_vm10, %v985_v3, -inf  ;;  %v557_v17 = vpop.f32.mrf.mxu0  ;;  %v1276_v7 = vsel %vm1212_vm13, %v2559_v60, -inf  ;;  %vm1214_vm1 = vcmp.lt.s32.totalorder %v2602_v19, %v2331_v20 }
 0x1a4   : > { %v2577_v16 = vmul.f32 4.3429446, %v936_v38  ;;  %v715_v18 = vpop.f32.mrf.mxu1  ;;  %v1741_v63 = vpop.eup %1740  ;;  %v1318_v21 = vmax.f32 %v1273_v12, %v1317_v9  ;;  %1754 = vlog2.f32 %v798_v1  ;;  %v986_v26 = vmul.f32 4.3429446, %v874_v15 }
 0x1a5   : > { %v830_v24 = vmax.f32 %v715_v18, 1e-10  ;;  %v938_v53 = vmul.f32 0.6931472, %v1741_v63  ;;  %v560_v27 = vpop.f32.mrf.mxu0  ;;  %v1743_v29 = vpop.eup %1742  ;;  %vm1185_vm2 = vcmp.lt.s32.totalorder %v1118_v49, %v2331_v20  ;;  %v1148_v60 = vadd.s32 384, %v2325_v13 }
 0x1a6   : > { %1081 = vst [vmem:[%s2319_s11 + $0x170] sm:$0xff] %v2577_v16  ;;  %v717_v28 = vpop.f32.mrf.mxu1  ;;  %v1319_v30 = vmax.f32 %v1245_v4, %v1318_v21  ;;  %v799_v33 = vmax.f32 %v560_v27, 1e-10  ;;  %1050 = vst [vmem:[%s2319_s11 + $0x78] sm:$0xff] %v986_v26  ;;  %v1246_v35 = vsel %vm1182_vm12, %v986_v26, -inf  ;;  %v2635_v18 = vadd.s32 392, %v2325_v13 }
 0x1a7   : > { %1756 = vlog2.f32 %v830_v24  ;;  %v876_v36 = vmul.f32 0.6931472, %v1743_v29  ;;  %v2595_v37 = vmul.f32 4.3429446, %v938_v53  ;;  %v562_v40 = vpop.f32.mrf.mxu0  ;;  %vm1186_vm3 = vcmp.lt.s32.totalorder %v1119_v41, %v2331_v20 }
 0x1a8   : > { %v720_v8 = vpop.f32.mrf.mxu1  ;;  %v1745_v25 = vpop.eup %1744  ;;  %v1323_v14 = vmax.f32 %v1319_v30, %v1274_v56  ;;  %1758 = vlog2.f32 %v799_v33  ;;  %v1277_v27 = vsel %vm1213_vm0, %v2577_v16, -inf  ;;  %vm1215_vm4 = vcmp.lt.s32.totalorder %v1148_v60, %v2331_v20 }
 0x1a9   : > { %v831_v23 = vmax.f32 %v720_v8, 1e-10  ;;  %v987_v34 = vmul.f32 4.3429446, %v876_v36  ;;  %1082 = vst [vmem:[%s2319_s11 + $0x178] sm:$0xff] %v2595_v37  ;;  %v565_v43 = vpop.f32.mrf.mxu0  ;;  %v1747_v47 = vpop.eup %1746  ;;  %v1120_v36 = vadd.s32 160, %v2325_v13  ;;  %vm1216_vm5 = vcmp.lt.s32.totalorder %v2635_v18, %v2331_v20 }
 0x1aa   : > { %v940_v11 = vmul.f32 0.6931472, %v1745_v25  ;;  %v722_v45 = vpop.f32.mrf.mxu1  ;;  %v1327_v48 = vmax.f32 %v1323_v14, %v1246_v35  ;;  %v800_v10 = vmax.f32 %v565_v43, 1e-10  ;;  %v878_v54 = vmul.f32 0.6931472, %v1747_v47 }
 0x1ab   : > { %1760 = vlog2.f32 %v831_v23  ;;  %1051 = vst [vmem:[%s2319_s11 + $0x80] sm:$0xff] %v987_v34  ;;  %v1247_v52 = vsel %vm1183_vm14, %v987_v34, -inf  ;;  %v567_v57 = vpop.f32.mrf.mxu0  ;;  %v1121_v34 = vadd.s32 168, %v2325_v13  ;;  %v1278_v45 = vsel %vm1214_vm1, %v2595_v37, -inf }
 0x1ac   : > { %v1749_v50 = vpop.eup %1748  ;;  %v2612_v55 = vmul.f32 4.3429446, %v940_v11  ;;  %v725_v42 = vpop.f32.mrf.mxu1  ;;  %v1331_v58 = vmax.f32 %v1327_v48, %v1275_v51  ;;  %1762 = vlog2.f32 %v800_v10  ;;  %v988_v62 = vmul.f32 4.3429446, %v878_v54 }
 0x1ad   : > { %v942_v59 = vmul.f32 0.6931472, %v1749_v50  ;;  %v832_v61 = vmax.f32 %v725_v42, 1e-10  ;;  %v1751_v46 = vpop.eup %1750  ;;  %v570_v32 = vpop.f32.mrf.mxu0  ;;  %vm1187_vm6 = vcmp.lt.s32.totalorder %v1120_v36, %v2331_v20  ;;  %v1150_v57 = vadd.s32 400, %v2325_v13 }
 0x1ae   : > { %1083 = vst [vmem:[%s2319_s11 + $0x180] sm:$0xff] %v2612_v55  ;;  %v727_v0 = vpop.f32.mrf.mxu1  ;;  %v1320_v2 = vmax.f32 %v1247_v52, %v1331_v58  ;;  %v880_v3 = vmul.f32 0.6931472, %v1751_v46  ;;  %v801_v5 = vmax.f32 %v570_v32, 1e-10  ;;  %1052 = vst [vmem:[%s2319_s11 + $0x88] sm:$0xff] %v988_v62  ;;  %vm1188_vm7 = vcmp.lt.s32.totalorder %v1121_v34, %v2331_v20 }
 0x1af   : > { %v2619_v38 = vmul.f32 4.3429446, %v942_v59  ;;  %v1248_v9 = vsel %vm1184_vm15, %v988_v62, -inf  ;;  %v572_v1 = vpop.f32.mrf.mxu0  ;;  %1764 = vlog2.f32 %v832_v61  ;;  %v2668_v37 = vadd.s32 408, %v2325_v13 }
 0x1b0   : > { %v1753_v6 = vpop.eup %1752  ;;  %v730_v12 = vpop.f32.mrf.mxu1  ;;  %v1324_v4 = vmax.f32 %v1320_v2, %v1276_v7  ;;  %v989_v15 = vmul.f32 4.3429446, %v880_v3  ;;  %1766 = vlog2.f32 %v801_v5  ;;  %v1279_v62 = vsel %vm1215_vm4, %v2612_v55, -inf }
 0x1b1   : > { %1084 = vst [vmem:[%s2319_s11 + $0x188] sm:$0xff] %v2619_v38  ;;  %v944_v17 = vmul.f32 0.6931472, %v1753_v6  ;;  %v1755_v44 = vpop.eup %1754  ;;  %v575_v63 = vpop.f32.mrf.mxu0  ;;  %v833_v21 = vmax.f32 %v730_v12, 1e-10  ;;  %v1122_v7 = vadd.s32 176, %v2325_v13  ;;  %vm1217_vm8 = vcmp.lt.s32.totalorder %v1150_v57, %v2331_v20 }
 0x1b2   : > { %v732_v22 = vpop.f32.mrf.mxu1  ;;  %v1328_v24 = vmax.f32 %v1324_v4, %v1248_v9  ;;  %1053 = vst [vmem:[%s2319_s11 + $0x90] sm:$0xff] %v989_v15  ;;  %v882_v26 = vmul.f32 0.6931472, %v1755_v44  ;;  %v1249_v28 = vsel %vm1185_vm2, %v989_v15, -inf  ;;  %v802_v29 = vmax.f32 %v575_v63, 1e-10 }
 0x1b3   : > { %v2639_v39 = vmul.f32 4.3429446, %v944_v17  ;;  %v577_v30 = vpop.f32.mrf.mxu0  ;;  %1768 = vlog2.f32 %v833_v21  ;;  %vm1218_vm9 = vcmp.lt.s32.totalorder %v2668_v37, %v2331_v20  ;;  %v1123_v17 = vadd.s32 184, %v2325_v13 }
 0x1b4   : > { %v1757_v53 = vpop.eup %1756  ;;  %v735_v33 = vpop.f32.mrf.mxu1  ;;  %v1332_v56 = vmax.f32 %v1328_v24, %v1277_v27  ;;  %v990_v35 = vmul.f32 4.3429446, %v882_v26  ;;  %1770 = vlog2.f32 %v802_v29  ;;  %v1280_v60 = vsel %vm1216_vm5, %v2619_v38, -inf }
 0x1b5   : > { %1085 = vst [vmem:[%s2319_s11 + $0x190] sm:$0xff] %v2639_v39  ;;  %v946_v40 = vmul.f32 0.6931472, %v1757_v53  ;;  %v1759_v8 = vpop.eup %1758  ;;  %v580_v16 = vpop.f32.mrf.mxu0  ;;  %v834_v31 = vmax.f32 %v735_v33, 1e-10  ;;  %vm1189_vm10 = vcmp.lt.s32.totalorder %v1122_v7, %v2331_v20  ;;  %v1152_v30 = vadd.s32 416, %v2325_v13 }
 0x1b6   : > { %v737_v25 = vpop.f32.mrf.mxu1  ;;  %v1321_v14 = vmax.f32 %v1249_v28, %v1332_v56  ;;  %1054 = vst [vmem:[%s2319_s11 + $0x98] sm:$0xff] %v990_v35  ;;  %v884_v23 = vmul.f32 0.6931472, %v1759_v8  ;;  %v1250_v47 = vsel %vm1186_vm3, %v990_v35, -inf  ;;  %v803_v48 = vmax.f32 %v580_v16, 1e-10 }
 0x1b7   : > { %v2655_v11 = vmul.f32 4.3429446, %v946_v40  ;;  %v582_v49 = vpop.f32.mrf.mxu0  ;;  %1772 = vlog2.f32 %v834_v31  ;;  %v2700_v38 = vadd.s32 424, %v2325_v13  ;;  %vm1190_vm11 = vcmp.lt.s32.totalorder %v1123_v17, %v2331_v20 }
 0x1b8   : > { %v1761_v43 = vpop.eup %1760  ;;  %v740_v10 = vpop.f32.mrf.mxu1  ;;  %v1325_v50 = vmax.f32 %v1321_v14, %v1278_v45  ;;  %v991_v51 = vmul.f32 4.3429446, %v884_v23  ;;  %1774 = vlog2.f32 %v803_v48  ;;  %v1281_v8 = vsel %vm1217_vm8, %v2639_v39, -inf }
 0x1b9   : > { %1086 = vst [vmem:[%s2319_s11 + $0x198] sm:$0xff] %v2655_v11  ;;  %v948_v52 = vmul.f32 0.6931472, %v1761_v43  ;;  %v1763_v54 = vpop.eup %1762  ;;  %v585_v19 = vpop.f32.mrf.mxu0  ;;  %v835_v42 = vmax.f32 %v740_v10, 1e-10  ;;  %v1124_v45 = vadd.s32 192, %v2325_v13  ;;  %vm1219_vm12 = vcmp.lt.s32.totalorder %v1152_v30, %v2331_v20 }
 0x1ba   : > { %v742_v58 = vpop.f32.mrf.mxu1  ;;  %v1329_v59 = vmax.f32 %v1325_v50, %v1250_v47  ;;  %1055 = vst [vmem:[%s2319_s11 + $0xa0] sm:$0xff] %v991_v51  ;;  %v886_v61 = vmul.f32 0.6931472, %v1763_v54  ;;  %v1251_v41 = vsel %vm1187_vm6, %v991_v51, -inf  ;;  %v804_v32 = vmax.f32 %v585_v19, 1e-10 }
 0x1bb   : > { %v2672_v46 = vmul.f32 4.3429446, %v948_v52  ;;  %v587_v0 = vpop.f32.mrf.mxu0  ;;  %1776 = vlog2.f32 %v835_v42  ;;  %v1125_v39 = vadd.s32 200, %v2325_v13  ;;  %vm1220_vm13 = vcmp.lt.s32.totalorder %v2700_v38, %v2331_v20 }
 0x1bc   : > { %v745_v2 = vpop.f32.mrf.mxu1  ;;  %v1765_v3 = vpop.eup %1764  ;;  %v1333_v5 = vmax.f32 %v1329_v59, %v1279_v62  ;;  %v992_v6 = vmul.f32 4.3429446, %v886_v61  ;;  %1778 = vlog2.f32 %v804_v32  ;;  %v1282_v57 = vsel %vm1218_vm9, %v2655_v11, -inf }
 0x1bd   : > { %1087 = vst [vmem:[%s2319_s11 + $0x1a0] sm:$0xff] %v2672_v46  ;;  %v836_v9 = vmax.f32 %v745_v2, 1e-10  ;;  %v950_v55 = vmul.f32 0.6931472, %v1765_v3  ;;  %v590_v1 = vpop.f32.mrf.mxu0  ;;  %v1767_v4 = vpop.eup %1766  ;;  %vm1191_vm14 = vcmp.lt.s32.totalorder %v1124_v45, %v2331_v20  ;;  %vm1192_vm15 = vcmp.lt.s32.totalorder %v1125_v39, %v2331_v20 }
 0x1be   : > { %v747_v12 = vpop.f32.mrf.mxu1  ;;  %v1322_v15 = vmax.f32 %v1251_v41, %v1333_v5  ;;  %1056 = vst [vmem:[%s2319_s11 + $0xa8] sm:$0xff] %v992_v6  ;;  %v805_v44 = vmax.f32 %v590_v1, 1e-10  ;;  %v1252_v63 = vsel %vm1188_vm7, %v992_v6, -inf  ;;  %v888_v21 = vmul.f32 0.6931472, %v1767_v4 }
 0x1bf   : > { %1780 = vlog2.f32 %v836_v9  ;;  %v2693_v22 = vmul.f32 4.3429446, %v950_v55  ;;  %v592_v24 = vpop.f32.mrf.mxu0  ;;  %v1154_v11 = vadd.s32 432, %v2325_v13  ;;  %v1126_v7 = vadd.s32 208, %v2325_v13 }
 0x1c0   : > { %v750_v26 = vpop.f32.mrf.mxu1  ;;  %v1769_v53 = vpop.eup %1768  ;;  %v1326_v27 = vmax.f32 %v1322_v15, %v1280_v60  ;;  %1782 = vlog2.f32 %v805_v44  ;;  %v993_v29 = vmul.f32 4.3429446, %v888_v21  ;;  %v1283_v1 = vsel %vm1219_vm12, %v2672_v46, -inf }
 0x1c1   : > { %v837_v28 = vmax.f32 %v750_v26, 1e-10  ;;  %1088 = vst [vmem:[%s2319_s11 + $0x1a8] sm:$0xff] %v2693_v22  ;;  %v952_v18 = vmul.f32 0.6931472, %v1769_v53  ;;  %v595_v33 = vpop.f32.mrf.mxu0  ;;  %v1771_v35 = vpop.eup %1770  ;;  %vm1221_vm0 = vcmp.lt.s32.totalorder %v1154_v11, %v2331_v20  ;;  %v1155_v46 = vadd.s32 440, %v2325_v13 }
 0x1c2   : > { %v752_v56 = vpop.f32.mrf.mxu1  ;;  %v1330_v36 = vmax.f32 %v1326_v27, %v1252_v63  ;;  %v806_v40 = vmax.f32 %v595_v33, 1e-10  ;;  %1057 = vst [vmem:[%s2319_s11 + $0xb0] sm:$0xff] %v993_v29  ;;  %v1253_v16 = vsel %vm1189_vm10, %v993_v29, -inf  ;;  %v890_v31 = vmul.f32 0.6931472, %v1771_v35 }
 0x1c3   : > { %1784 = vlog2.f32 %v837_v28  ;;  %v2709_v25 = vmul.f32 4.3429446, %v952_v18  ;;  %v597_v14 = vpop.f32.mrf.mxu0  ;;  %v1284_v56 = vsel %vm1220_vm13, %v2693_v22, -inf  ;;  %vm1193_vm1 = vcmp.lt.s32.totalorder %v1126_v7, %v2331_v20 }
 0x1c4   : > { %v755_v23 = vpop.f32.mrf.mxu1  ;;  %v1773_v34 = vpop.eup %1772  ;;  %v1334_v43 = vmax.f32 %v1330_v36, %v1281_v8  ;;  %1786 = vlog2.f32 %v806_v40  ;;  %v994_v48 = vmul.f32 4.3429446, %v890_v31  ;;  %v1127_v31 = vadd.s32 216, %v2325_v13 }
 0x1c5   : > { %v838_v47 = vmax.f32 %v755_v23, 1e-10  ;;  %1089 = vst [vmem:[%s2319_s11 + $0x1b0] sm:$0xff] %v2709_v25  ;;  %v954_v49 = vmul.f32 0.6931472, %v1773_v34  ;;  %v600_v10 = vpop.f32.mrf.mxu0  ;;  %v1775_v51 = vpop.eup %1774  ;;  %vm1222_vm2 = vcmp.lt.s32.totalorder %v1155_v46, %v2331_v20  ;;  %v1156_v22 = vadd.s32 448, %v2325_v13 }
 0x1c6   : > { %v757_v50 = vpop.f32.mrf.mxu1  ;;  %v1335_v52 = vmax.f32 %v1253_v16, %v1334_v43  ;;  %v807_v54 = vmax.f32 %v600_v10, 1e-10  ;;  %1058 = vst [vmem:[%s2319_s11 + $0xb8] sm:$0xff] %v994_v48  ;;  %v1254_v19 = vsel %vm1190_vm11, %v994_v48, -inf  ;;  %v892_v42 = vmul.f32 0.6931472, %v1775_v51 }
 0x1c7   : > { %1788 = vlog2.f32 %v838_v47  ;;  %v2725_v58 = vmul.f32 4.3429446, %v954_v49  ;;  %v602_v59 = vpop.f32.mrf.mxu0  ;;  %v1128_v48 = vadd.s32 224, %v2325_v13  ;;  %v1285_v10 = vsel %vm1221_vm0, %v2709_v25, -inf }
 0x1c8   : > { %v760_v61 = vpop.f32.mrf.mxu1  ;;  %v1777_v62 = vpop.eup %1776  ;;  %v1339_v41 = vmax.f32 %v1335_v52, %v1282_v57  ;;  %1790 = vlog2.f32 %v807_v54  ;;  %v995_v0 = vmul.f32 4.3429446, %v892_v42  ;;  %vm1194_vm3 = vcmp.lt.s32.totalorder %v1127_v31, %v2331_v20 }
 0x1c9   : > { %v839_v32 = vmax.f32 %v760_v61, 1e-10  ;;  %1090 = vst [vmem:[%s2319_s11 + $0x1b8] sm:$0xff] %v2725_v58  ;;  %v956_v37 = vmul.f32 0.6931472, %v1777_v62  ;;  %v605_v2 = vpop.f32.mrf.mxu0  ;;  %v1779_v5 = vpop.eup %1778  ;;  %vm1223_vm4 = vcmp.lt.s32.totalorder %v1156_v22, %v2331_v20  ;;  %vm1195_vm5 = vcmp.lt.s32.totalorder %v1128_v48, %v2331_v20 }
 0x1ca   : > { %v762_v3 = vpop.f32.mrf.mxu1  ;;  %v1343_v6 = vmax.f32 %v1339_v41, %v1254_v19  ;;  %v808_v9 = vmax.f32 %v605_v2, 1e-10  ;;  %1059 = vst [vmem:[%s2319_s11 + $0xc0] sm:$0xff] %v995_v0  ;;  %v1255_v12 = vsel %vm1191_vm14, %v995_v0, -inf  ;;  %v894_v4 = vmul.f32 0.6931472, %v1779_v5 }
 0x1cb   : > { %1792 = vlog2.f32 %v839_v32  ;;  %v2739_v15 = vmul.f32 4.3429446, %v956_v37  ;;  %v607_v17 = vpop.f32.mrf.mxu0  ;;  %v1157_v32 = vadd.s32 456, %v2325_v13  ;;  %v1286_v37 = vsel %vm1222_vm2, %v2725_v58, -inf }
 0x1cc   : > { %v1781_v55 = vpop.eup %1780  ;;  %v765_v44 = vpop.f32.mrf.mxu1  ;;  %v1347_v60 = vmax.f32 %v1343_v6, %v1283_v1  ;;  %1794 = vlog2.f32 %v808_v9  ;;  %v996_v26 = vmul.f32 4.3429446, %v894_v4  ;;  %v1129_v6 = vadd.s32 232, %v2325_v13 }
 0x1cd   : > { %v958_v63 = vmul.f32 0.6931472, %v1781_v55  ;;  %v840_v21 = vmax.f32 %v765_v44, 1e-10  ;;  %v1783_v24 = vpop.eup %1782  ;;  %1091 = vst [vmem:[%s2319_s11 + $0x1c0] sm:$0xff] %v2739_v15  ;;  %v610_v53 = vpop.f32.mrf.mxu0  ;;  %v1287_v58 = vsel %vm1223_vm4, %v2739_v15, -inf  ;;  %vm1224_vm6 = vcmp.lt.s32.totalorder %v1157_v32, %v2331_v20 }
 0x1ce   : > { %v767_v27 = vpop.f32.mrf.mxu1  ;;  %v1351_v28 = vmax.f32 %v1347_v60, %v1255_v12  ;;  %v896_v29 = vmul.f32 0.6931472, %v1783_v24  ;;  %v809_v18 = vmax.f32 %v610_v53, 1e-10  ;;  %1060 = vst [vmem:[%s2319_s11 + $0xc8] sm:$0xff] %v996_v26  ;;  %v1256_v35 = vsel %vm1192_vm15, %v996_v26, -inf }
 0x1cf   : > { %v2745_v30 = vmul.f32 4.3429446, %v958_v63  ;;  %v612_v36 = vpop.f32.mrf.mxu0  ;;  %1796 = vlog2.f32 %v840_v21  ;;  %v1158_v12 = vadd.s32 464, %v2325_v13  ;;  %vm1196_vm7 = vcmp.lt.s32.totalorder %v1129_v6, %v2331_v20 }
 0x1d0   : > { %v1785_v33 = vpop.eup %1784  ;;  %v770_v40 = vpop.f32.mrf.mxu1  ;;  %v1336_v8 = vmax.f32 %v1284_v56, %v1351_v28  ;;  %v997_v16 = vmul.f32 4.3429446, %v896_v29  ;;  %1798 = vlog2.f32 %v809_v18  ;;  %v1130_v21 = vadd.s32 240, %v2325_v13 }
 0x1d1   : > { %1092 = vst [vmem:[%s2319_s11 + $0x1c8] sm:$0xff] %v2745_v30  ;;  %v960_v14 = vmul.f32 0.6931472, %v1785_v33  ;;  %v1787_v23 = vpop.eup %1786  ;;  %v615_v38 = vpop.f32.mrf.mxu0  ;;  %v841_v34 = vmax.f32 %v770_v40, 1e-10  ;;  %vm1225_vm8 = vcmp.lt.s32.totalorder %v1158_v12, %v2331_v20  ;;  %v1288_v15 = vsel %vm1224_vm6, %v2745_v30, -inf }
 0x1d2   : > { %v772_v43 = vpop.f32.mrf.mxu1  ;;  %v1340_v45 = vmax.f32 %v1336_v8, %v1256_v35  ;;  %1061 = vst [vmem:[%s2319_s11 + $0xd0] sm:$0xff] %v997_v16  ;;  %v898_v47 = vmul.f32 0.6931472, %v1787_v23  ;;  %v1257_v50 = vsel %vm1193_vm1, %v997_v16, -inf  ;;  %v810_v51 = vmax.f32 %v615_v38, 1e-10 }
 0x1d3   : > { %v2762_v39 = vmul.f32 4.3429446, %v960_v14  ;;  %v617_v52 = vpop.f32.mrf.mxu0  ;;  %1800 = vlog2.f32 %v841_v34  ;;  %vm1197_vm9 = vcmp.lt.s32.totalorder %v1130_v21, %v2331_v20  ;;  %v1159_v33 = vadd.s32 472, %v2325_v13 }
 0x1d4   : > { %v1789_v49 = vpop.eup %1788  ;;  %v775_v54 = vpop.f32.mrf.mxu1  ;;  %v1344_v57 = vmax.f32 %v1340_v45, %v1285_v10  ;;  %v998_v19 = vmul.f32 4.3429446, %v898_v47  ;;  %1802 = vlog2.f32 %v810_v51  ;;  %v1131_v56 = vadd.s32 248, %v2325_v13 }
 0x1d5   : > { %1093 = vst [vmem:[%s2319_s11 + $0x1d0] sm:$0xff] %v2762_v39  ;;  %v962_v42 = vmul.f32 0.6931472, %v1789_v49  ;;  %v1791_v59 = vpop.eup %1790  ;;  %v842_v25 = vmax.f32 %v775_v54, 1e-10  ;;  %v1289_v16 = vsel %vm1225_vm8, %v2762_v39, -inf  ;;  %vm1226_vm10 = vcmp.lt.s32.totalorder %v1159_v33, %v2331_v20 }
 0x1d6   : > { %v777_v61 = vpop.f32.mrf.mxu1  ;;  %v1348_v62 = vmax.f32 %v1344_v57, %v1257_v50  ;;  %1062 = vst [vmem:[%s2319_s11 + $0xd8] sm:$0xff] %v998_v19  ;;  %v900_v41 = vmul.f32 0.6931472, %v1791_v59  ;;  %v1258_v2 = vsel %vm1194_vm3, %v998_v19, -inf  ;;  %vm1198_vm11 = vcmp.lt.s32.totalorder %v1131_v56, %v2331_v20 }
 0x1d7   : > { %v1030_v0 = vmul.f32 4.3429446, %v962_v42  ;;  %1804 = vlog2.f32 %v842_v25  ;;  %v1160_v38 = vadd.s32 480, %v2325_v13  ;;  %v1161_v47 = vadd.s32 488, %v2325_v13 }
 0x1d8   : > { %v1793_v11 = vpop.eup %1792  ;;  %v1352_v3 = vmax.f32 %v1348_v62, %v1286_v37  ;;  %v999_v5 = vmul.f32 4.3429446, %v900_v41  ;;  %v1162_v50 = vadd.s32 496, %v2325_v13  ;;  %v1163_v51 = vadd.s32 504, %v2325_v13 }
 0x1d9   : > { %1094 = vst [vmem:[%s2319_s11 + $0x1d8] sm:$0xff] %v1030_v0  ;;  %v964_v7 = vmul.f32 0.6931472, %v1793_v11  ;;  %v1795_v9 = vpop.eup %1794  ;;  %v1290_v48 = vsel %vm1226_vm10, %v1030_v0, -inf  ;;  %vm1227_vm12 = vcmp.lt.s32.totalorder %v1160_v38, %v2331_v20  ;;  %vm1228_vm13 = vcmp.lt.s32.totalorder %v1161_v47, %v2331_v20 }
 0x1da   : > { %v1355_v55 = vmax.f32 %v1258_v2, %v1352_v3  ;;  %1063 = vst [vmem:[%s2319_s11 + $0xe0] sm:$0xff] %v999_v5  ;;  %v902_v1 = vmul.f32 0.6931472, %v1795_v9  ;;  %v1259_v17 = vsel %vm1195_vm5, %v999_v5, -inf  ;;  %vm1229_vm14 = vcmp.lt.s32.totalorder %v1162_v50, %v2331_v20 }
 0x1db   : > { %v1031_v4 = vmul.f32 4.3429446, %v964_v7  ;;  %vm1230_vm15 = vcmp.lt.s32.totalorder %v1163_v51, %v2331_v20 }
 0x1dc   : > { %v1797_v44 = vpop.eup %1796  ;;  %v1337_v60 = vmax.f32 %v1287_v58, %v1355_v55  ;;  %v1000_v63 = vmul.f32 4.3429446, %v902_v1 }
 0x1dd   : > { %1095 = vst [vmem:[%s2319_s11 + $0x1e0] sm:$0xff] %v1031_v4  ;;  %v966_v24 = vmul.f32 0.6931472, %v1797_v44  ;;  %v1799_v26 = vpop.eup %1798  ;;  %v1291_v54 = vsel %vm1227_vm12, %v1031_v4, -inf }
 0x1de   : > { %v1341_v46 = vmax.f32 %v1337_v60, %v1259_v17  ;;  %1064 = vst [vmem:[%s2319_s11 + $0xe8] sm:$0xff] %v1000_v63  ;;  %v1260_v53 = vsel %vm1196_vm7, %v1000_v63, -inf  ;;  %v904_v27 = vmul.f32 0.6931472, %v1799_v26 }
 0x1df   : > { %v1032_v28 = vmul.f32 4.3429446, %v966_v24 }
 0x1e0   : > { %v1801_v29 = vpop.eup %1800  ;;  %v1345_v18 = vmax.f32 %v1341_v46, %v1288_v15  ;;  %v1001_v35 = vmul.f32 4.3429446, %v904_v27 }
 0x1e1   : > { %1096 = vst [vmem:[%s2319_s11 + $0x1e8] sm:$0xff] %v1032_v28  ;;  %v968_v36 = vmul.f32 0.6931472, %v1801_v29  ;;  %v1803_v40 = vpop.eup %1802  ;;  %v1292_v19 = vsel %vm1228_vm13, %v1032_v28, -inf }
 0x1e2   : > { %v1349_v8 = vmax.f32 %v1345_v18, %v1260_v53  ;;  %1065 = vst [vmem:[%s2319_s11 + $0xf0] sm:$0xff] %v1001_v35  ;;  %v1261_v30 = vsel %vm1197_vm9, %v1001_v35, -inf  ;;  %v906_v31 = vmul.f32 0.6931472, %v1803_v40 }
 0x1e3   : > { %v1033_v14 = vmul.f32 4.3429446, %v968_v36 }
 0x1e4   : > { %v1805_v23 = vpop.eup %1804  ;;  %v1353_v22 = vmax.f32 %v1349_v8, %v1289_v16  ;;  %v1002_v34 = vmul.f32 4.3429446, %v906_v31 }
 0x1e5   : > { %1097 = vst [vmem:[%s2319_s11 + $0x1f0] sm:$0xff] %v1033_v14  ;;  %v970_v43 = vmul.f32 0.6931472, %v1805_v23  ;;  %v1293_v59 = vsel %vm1229_vm14, %v1033_v14, -inf }
 0x1e6   : > { %v1338_v45 = vmax.f32 %v1261_v30, %v1353_v22  ;;  %1066 = vst [vmem:[%s2319_s11 + $0xf8] sm:$0xff] %v1002_v34  ;;  %v1262_v39 = vsel %vm1198_vm11, %v1002_v34, -inf }
 0x1e7   : > { %v1034_v49 = vmul.f32 4.3429446, %v970_v43 }
 0x1e8   : > { %v1342_v10 = vmax.f32 %v1338_v45, %v1290_v48 }
 0x1e9   : > { %1098 = vst [vmem:[%s2319_s11 + $0x1f8] sm:$0xff] %v1034_v49  ;;  %v1294_v25 = vsel %vm1230_vm15, %v1034_v49, -inf }
 0x1ea   : > { %v1346_v52 = vmax.f32 %v1342_v10, %v1262_v39 }
 0x1ec   : > { %v1350_v57 = vmax.f32 %v1346_v52, %v1291_v54 }
 0x1ee   : > { %v1354_v42 = vmax.f32 %v1350_v57, %v1292_v19 }
 0x1f0   : > { %v1356_v61 = vmax.f32 %v1293_v59, %v1354_v42 }
 0x1f2   : > { %v1357_v62 = vmax.f32 %v1294_v25, %v1356_v61 }
 0x1f4   : > { %v1358_v13 = vrot.slane %v1357_v62, 4 }
 0x1f6   : > { %v1359_v41 = vmax.f32 %v1357_v62, %v1358_v13 }
 0x1f8   : > { %v1360_v32 = vrot.slane %v1359_v41, 2 }
 0x1fa   : > { %v1361_v0 = vmax.f32 %v1359_v41, %v1360_v32 }
 0x1fc   : > { %v1362_v11 = vrot.slane %v1361_v0, 1  ;;  %1377 = sbr.rel (!%p2911_p4) target bundleno = 540 (0x21c), region = 40 }
 0x1fe   : > { %v1363_v37 = vmax.f32 %v1361_v0, %v1362_v11 }
 0x200   : > { %1364 = vst [vmem:[%s2813_s30] sm:$0xff] %v1363_v37 }
 0x201   : > { %s2922_s17 = smov (!%p1380_p13, %s1379_s17), 64 }
 0x202   : > { %s2821_s20 = sshll.u32 %s2922_s17, 7 }
 0x203   : > { %s1384_s22 = ssub.s32 8192, %s2821_s20 }
 0x204   : > { %1385 = vsyncadd %s1366_s8, %s1384_s22  ;;  %p1541_p5 = scmp.ne.s32.totalorder %s2821_s20, 0  ;;  %s1551_s27 = sshll.u32 %s2010_s16, 13 }
 0x205   : > { %s2831_s6 = scalar_lea.hbm %s2900_s2, %s1551_s27  ;;  %s1390_s7 = sshll.u32 %s2319_s11, 4  ;;  %s2834_s7 = int_to_ptr.vmem [resolvable:$true] %s1390_s7 }
 0x206   : > { %s1858_s23 = scalar_lea.vmem %s2834_s7, %s2821_s20  ;;  %s1965_s26 = smov [#allocation7]  }
 0x207   : > { %p1859_p1 = scmp.ne.s32.totalorder %s2834_s7, %s1858_s23  ;;  %s1862_s19 = sshll.u32 %s1965_s26, 4  ;;  %s1863_s19 = int_to_ptr.vmem [resolvable:$false] %s1862_s19 }
 0x208   : > { %s1864_s29 = scalar_lea.vmem %s1863_s19, 16384  ;;  %p1865_p3 = scmp.lt.s32.totalorder %s2834_s7, %s1863_s19 }
 0x209   : > { %p1860_p0 = pnand %p1859_p1, %p1541_p5  ;;  %p1866_p8 = scmp.lt.s32.totalorder %s1864_s29, %s1858_s23 }
 0x20b   : > { %p1861_p7 = pneg %p1860_p0  ;;  %p1867_p9 = por %p1866_p8, %p1865_p3 }
 0x20d   : > { %p1868_p6 = pnand %p1867_p9, %p1861_p7 }
 0x20f   : > { %1871 = shalt.err (!%p1868_p6)
}
 0x210   : > { %s1872_s11 = scalar_lea.hbm %s2831_s6, %s2821_s20  ;;  %s1876_s22 = scalar_lea.hbm %s2900_s2, 9600 }
 0x211   : > { %p1873_p11 = scmp.ne.s32.totalorder %s2831_s6, %s1872_s11  ;;  %p1877_p10 = scmp.lt.s32.totalorder %s2831_s6, %s2900_s2 }
 0x212   : > { %p1878_p4 = scmp.lt.s32.totalorder %s1876_s22, %s1872_s11 }
 0x213   : > { %p1874_p12 = pnand %p1873_p11, %p1541_p5 }
 0x214   : > { %p1879_p13 = por %p1878_p4, %p1877_p10 }
 0x215   : > { %p1875_p2 = pneg %p1874_p12 }
 0x217   : > { %p1880_p1 = pnand %p1879_p13, %p1875_p2 }
 0x219   : > { %1883 = shalt.err (!%p1880_p1)
}
 0x21a   : > { %s1966_s5 = smov 128   ;;  %s1967_s23 = smov 8  }
 0x21b   : > { %1396 = dma.vmem_to_hbm [thread:$0]  (%p1541_p5), %s2834_s7, %s2821_s20, %s2831_s6, %s1366_s8, %s1966_s5, %s1966_s5, %s1967_s23  }
 0x21c PF: > { %s1545_s26 = sshll.u32 %s2010_s16, 7  ;;  %s1406_s19 = sshll.u32 %s2813_s30, 4  ;;  %s1407_s19 = int_to_ptr.vmem [resolvable:$true] %s1406_s19 }
 0x21d   : > { %s1404_s10 = scalar_lea.hbm %s2901_s3, %s1545_s26  ;;  %s1884_s17 = scalar_lea.vmem %s1407_s19, 128 }
 0x21e   : > { %p1885_p0 = scmp.ne.s32.totalorder %s1407_s19, %s1884_s17  ;;  %p2912_p7 = scmp.ne.s32.totalorder %s2907_s24, 0 }
 0x21f   : > { %s1968_s22 = smov [#allocation8]  }
 0x220   : > { %p1886_p3 = pnand %p1885_p0, %p2912_p7  ;;  %s1888_s27 = sshll.u32 %s1968_s22, 4  ;;  %s1889_s27 = int_to_ptr.vmem [resolvable:$false] %s1888_s27 }
 0x221   : > { %s1890_s8 = scalar_lea.vmem %s1889_s27, 256  ;;  %p1891_p5 = scmp.lt.s32.totalorder %s1407_s19, %s1889_s27 }
 0x222   : > { %p1887_p8 = pneg %p1886_p3  ;;  %p1892_p9 = scmp.lt.s32.totalorder %s1890_s8, %s1884_s17 }
 0x224   : > { %p1893_p6 = por %p1892_p9, %p1891_p5 }
 0x226   : > { %p1894_p11 = pnand %p1893_p6, %p1887_p8 }
 0x228   : > { %1897 = shalt.err (!%p1894_p11)
}
 0x229   : > { %s1898_s16 = scalar_lea.hbm %s1404_s10, 128  ;;  %s1902_s6 = scalar_lea.hbm %s2901_s3, 256 }
 0x22a   : > { %p1899_p12 = scmp.ne.s32.totalorder %s1404_s10, %s1898_s16  ;;  %p1903_p4 = scmp.lt.s32.totalorder %s1404_s10, %s2901_s3 }
 0x22b   : > { %p1904_p13 = scmp.lt.s32.totalorder %s1902_s6, %s1898_s16 }
 0x22c   : > { %p1900_p2 = pnand %p1899_p12, %p2912_p7 }
 0x22d   : > { %p1905_p1 = por %p1904_p13, %p1903_p4 }
 0x22e   : > { %p1901_p10 = pneg %p1900_p2 }
 0x230   : > { %p1906_p0 = pnand %p1905_p1, %p1901_p10 }
 0x232   : > { %1909 = shalt.err (!%p1906_p0)
}
 0x233   : > { %1621 = dma.vmem_to_hbm [thread:$0]  (%p2912_p7), %s1407_s19, 128, %s1404_s10, %s1371_s9  }
 0x234 PF: > { %s1418_s5 = sand.u32 1, %s1944_s12   ;;  %p2913_p3 = scmp.ne.s32.totalorder %s2908_s25, 0 }
 0x235   : > { %p2914_p8 = scmp.ge.s32.totalorder %s1956_s15, 2  ;;  %s1419_s23 = scalar_lea.sflag [#allocation4], %s1418_s5 }
 0x237   : > { %p1629_p5 = pnand %p2914_p8, %p2913_p3 }
 0x239   : > { %p1630_p9 = pneg %p1629_p5 }
 0x23b   : > { %1935 = dma.done.wait (%p1630_p9), %s1419_s23, 8192  }
 0x23c   : > { %1937 = vsyncadd (%p1630_p9), %s1419_s23, 4294959104  ;;  %s1428_s26 = scalar_lea.sflag [#allocation9], %s1418_s5 }
 0x23d   : > { %1939 = dma.done.wait (%p1630_p9), %s1428_s26, 128  }
 0x23e   : > { %1941 = vsyncadd (%p1630_p9), %s1428_s26, 4294967168  ;;  %p21_p7 = scmp.ge.s32.totalorder %s2014_s18, 4   ;;  %s2915_s12 = smov %s1948_s13 }
 0x23f   : > { %s2916_s13 = smov %s1952_s14  ;;  %s2917_s14 = smov %s2026_s21 }
 0x240   : > { %s2918_s15 = smov %s2014_s18  ;;  %23 = sbr.rel (!%p21_p7) target bundleno = 8 (0x8), region = 94 }
 0x245   :  { %1433 = vsyncpa [#allocation3], 1 }
 0x246   :  { %1435 = vsyncpa [#allocation3 + $0x1], 1 }
 0x247   :  { %1436 = vsyncpa [#allocation6], 1 }
 0x248   :  { %1437 = vsyncpa [#allocation4], 1 }
 0x249   :  { %1439 = vsyncpa [#allocation4 + $0x1], 1 }
 0x24a   :  { %1440 = vsyncpa [#allocation9], 1 }
 0x24b   :  { %1442 = vsyncpa [#allocation9 + $0x1], 1 }

</bundles_post_ra>
